<compile_context>
chip_gen: v7x
topology: tpu7x:2x2x1
jax: 0.10.0
libtpu: 0.0.40
codegen_flags: <defaults>
</compile_context>

<pallas_src>
import functools

import jax
import jax.numpy as jnp
from jax.experimental import pallas as pl
from jax.experimental.pallas import tpu as pltpu

D_IN = 50
D_HIDDEN = 512
D_OUT = 10
D_OUT_PAD = 128            # lane-dense padded output width (true outputs live in lanes 0..9)
BN_EPS = 1e-5

# Budget for the weight-resident path (conservative for v7x: 64 MiB physical VMEM).
_RESIDENT_VMEM_BUDGET = 28 * 1024 * 1024


# ----------------------------- kernels --------------------------------------

def _mlp_resident_kernel(x_ref, w_ref, vec_ref, o_ref, h_ref, *, eps):
    """Whole forward in ONE kernel invocation; bf16 weight stack fully VMEM-resident.

    x_ref  : (B, 50)   f32   network input
    w_ref  : (T,512,512) bf16 stacked weights (layer 0 K-padded, layer T-1 N-padded with zeros)
    vec_ref: (T, 3, 512) f32  packed [bias, gamma, beta] per layer
    o_ref  : (B, 128)  f32   lane-dense padded output
    h_ref  : (B, 512)  f32   VMEM staging slab for the zero-padded input
    """
    T = w_ref.shape[0]
    wd = w_ref.dtype

    # Zero-pad the 50-feature input to 512 lanes inside VMEM (exact: layer-0 weight
    # rows 50..511 are zero).  Avoids an HBM-side pad round-trip.
    h_ref[...] = jnp.zeros_like(h_ref)
    h_ref[:, :D_IN] = x_ref[...].astype(h_ref.dtype)

    # Layer 0: Linear(50->512) + ReLU.
    vec0 = vec_ref[0]                                        # (3, 512)
    y = jnp.dot(h_ref[...].astype(wd), w_ref[0], preferred_element_type=jnp.float32)
    h = jnp.maximum(y + vec0[0:1, :], 0.0)

    # Hidden layers: Linear + BatchNorm1d(train, full-batch stats) + ReLU.
    # The Linear bias add is skipped: BN's mean subtraction cancels it exactly.
    def hidden_layer(i, h):
        y = jnp.dot(h.astype(wd), w_ref[i], preferred_element_type=jnp.float32)
        mean = jnp.mean(y, axis=0, keepdims=True)
        var = jnp.mean((y - mean) ** 2, axis=0, keepdims=True)
        yn = (y - mean) * jax.lax.rsqrt(var + eps)           # rsqrt -> EUP slot
        vec = vec_ref[i]                                     # (3, 512): [b, gamma, beta]
        return jnp.maximum(yn * vec[1:2, :] + vec[2:3, :], 0.0)

    h = jax.lax.fori_loop(1, T - 1, hidden_layer, h)

    # Output layer: Linear(512->10); keep the first 128 lanes (lane-dense store).
    vec_last = vec_ref[T - 1]
    y = jnp.dot(h.astype(wd), w_ref[T - 1], preferred_element_type=jnp.float32)
    o_ref[...] = (y[:, :D_OUT_PAD] + vec_last[0:1, :D_OUT_PAD]).astype(o_ref.dtype)


def _mlp_streamed_kernel(x_ref, w_ref, vec_ref, o_ref, h_ref, *, eps):
    """Deep-net fallback: one grid step per layer; 0.5 MiB bf16 weight block streamed per step.

    x_ref  : (B, 50)        resident (constant index_map)
    w_ref  : (1, 512, 512)  this layer's weights (streamed, double-buffered)
    vec_ref: (T, 3, 512)    packed [bias, gamma, beta], fully resident
    o_ref  : (B, 128)       lane-dense padded output (written on the last step)
    h_ref  : (B, 512) f32   resident activation (VMEM scratch)
    """
    t = pl.program_id(0)
    last = pl.num_programs(0) - 1
    wd = w_ref.dtype

    # Step 0: seed the resident activation with the zero-padded input.
    @pl.when(t == 0)
    def _():
        h_ref[...] = jnp.zeros_like(h_ref)
        h_ref[:, :D_IN] = x_ref[...].astype(h_ref.dtype)

    # Shared Linear for every layer (bias handled per branch below).
    y = jnp.dot(h_ref[...].astype(wd), w_ref[0], preferred_element_type=jnp.float32)
    vec = vec_ref[t]                                         # (3, 512): [b, gamma, beta]

    # Layer 0: + bias, ReLU.
    @pl.when(t == 0)
    def _():
        h_ref[...] = jnp.maximum(y + vec[0:1, :], 0.0)

    # Hidden layers: BatchNorm1d(train) + ReLU (Linear bias cancelled by mean subtraction).
    @pl.when(jnp.logical_and(t > 0, t < last))
    def _():
        mean = jnp.mean(y, axis=0, keepdims=True)
        var = jnp.mean((y - mean) ** 2, axis=0, keepdims=True)
        yn = (y - mean) * jax.lax.rsqrt(var + eps)
        h_ref[...] = jnp.maximum(yn * vec[1:2, :] + vec[2:3, :], 0.0)

    # Output layer: + bias, lane-dense 128-wide store.
    @pl.when(t == last)
    def _():
        o_ref[...] = (y[:, :D_OUT_PAD] + vec[0:1, :D_OUT_PAD]).astype(o_ref.dtype)


# ----------------------------- wrapper ---------------------------------------

def fused_mlp_forward(x, w_stack, vec_stack, *, eps=BN_EPS, force_streamed=False):
    B = x.shape[0]
    T = w_stack.shape[0]
    x = x.astype(jnp.float32)

    w_bytes = T * D_HIDDEN * D_HIDDEN * w_stack.dtype.itemsize
    act_bytes = 6 * B * D_HIDDEN * 4          # staging slab + a few live activation copies
    use_resident = (not force_streamed) and (w_bytes + act_bytes <= _RESIDENT_VMEM_BUDGET)

    out_shape = jax.ShapeDtypeStruct((B, D_OUT_PAD), jnp.float32)

    if use_resident:
        vspec = pl.BlockSpec(memory_space=pltpu.MemorySpace.VMEM)
        out = pl.pallas_call(
            functools.partial(_mlp_resident_kernel, eps=eps),
            out_shape=out_shape,
            in_specs=[vspec, vspec, vspec],
            out_specs=vspec,
            scratch_shapes=[pltpu.VMEM((B, D_HIDDEN), jnp.float32)],
            compiler_params=pltpu.CompilerParams(
                vmem_limit_bytes=40 * 1024 * 1024,   # under v7x 64 MiB physical; fine on v5e/v6e
            ),
        )(x, w_stack, vec_stack)
    else:
        out = pl.pallas_call(
            functools.partial(_mlp_streamed_kernel, eps=eps),
            out_shape=out_shape,
            grid_spec=pltpu.PrefetchScalarGridSpec(
                num_scalar_prefetch=0,
                grid=(T,),
                in_specs=[
                    pl.BlockSpec((B, D_IN), lambda t: (0, 0)),                   # x (resident)
                    pl.BlockSpec((1, D_HIDDEN, D_HIDDEN), lambda t: (t, 0, 0)),  # W_t (streamed)
                    pl.BlockSpec((T, 3, D_HIDDEN), lambda t: (0, 0, 0)),         # b/gamma/beta (resident)
                ],
                out_specs=pl.BlockSpec((B, D_OUT_PAD), lambda t: (0, 0)),
                scratch_shapes=[pltpu.VMEM((B, D_HIDDEN), jnp.float32)],         # resident activation
            ),
            compiler_params=pltpu.CompilerParams(
                dimension_semantics=("arbitrary",),       # layer axis is sequential
                vmem_limit_bytes=32 * 1024 * 1024,
            ),
        )(x, w_stack, vec_stack)

    return out[:, :D_OUT]


@functools.partial(jax.jit, static_argnames=("force_streamed",))
def flexible_mlp_forward(params, x, force_streamed=False):
    w_stack, vec_stack = params
    return fused_mlp_forward(x, w_stack, vec_stack, force_streamed=force_streamed)


# ----------------------------- params ---------------------------------------

def init_linear_params(key, fan_in, fan_out):
    # PyTorch default nn.Linear init: weight, bias ~ U(-1/sqrt(fan_in), 1/sqrt(fan_in)).
    kw, kb = jax.random.split(key)
    bound = 1.0 / jnp.sqrt(jnp.asarray(fan_in, jnp.float32))
    w = jax.random.uniform(kw, (fan_in, fan_out), jnp.float32, -bound, bound)  # stored (in, out)
    b = jax.random.uniform(kb, (fan_out,), jnp.float32, -bound, bound)
    return w, b


def init_flexible_mlp_params(key, num_layers, weight_dtype=jnp.bfloat16):
    """Build per-layer params packed into the stacked/padded layout the fused kernel wants."""
    T = num_layers + 1
    keys = jax.random.split(key, T)
    ws, vecs = [], []

    def vec_row(bias):
        gamma = jnp.ones((D_HIDDEN,), jnp.float32)
        beta = jnp.zeros((D_HIDDEN,), jnp.float32)
        return jnp.stack([bias, gamma, beta])                # (3, 512)

    # Layer 0: Linear(50, 512) -- K rows 50..511 zero-padded (exact).
    w0, b0 = init_linear_params(keys[0], D_IN, D_HIDDEN)
    ws.append(jnp.zeros((D_HIDDEN, D_HIDDEN), jnp.float32).at[:D_IN, :].set(w0))
    vecs.append(vec_row(b0))

    # Hidden layers: Linear(512,512) + BatchNorm1d(512) (gamma=1, beta=0 at init).
    for i in range(num_layers - 1):
        w, b = init_linear_params(keys[1 + i], D_HIDDEN, D_HIDDEN)
        ws.append(w)
        vecs.append(vec_row(b))

    # Output layer: Linear(512, 10) -- N cols 10..511 zero-padded.
    w_out, b_out = init_linear_params(keys[-1], D_HIDDEN, D_OUT)
    ws.append(jnp.zeros((D_HIDDEN, D_HIDDEN), jnp.float32).at[:, :D_OUT].set(w_out))
    vecs.append(vec_row(jnp.zeros((D_HIDDEN,), jnp.float32).at[:D_OUT].set(b_out)))

    w_stack = jnp.stack(ws).astype(weight_dtype)             # (T, 512, 512) bf16
    vec_stack = jnp.stack(vecs)                              # (T, 3, 512)   f32
    return w_stack, vec_stack


# ----------------------------- pure-JAX reference ----------------------------

def reference_forward(params, x):
    w_stack, vec_stack = params
    T = w_stack.shape[0]
    wd = w_stack.dtype
    h = jnp.zeros((x.shape[0], D_HIDDEN), jnp.float32).at[:, :D_IN].set(x)
    for t in range(T):
        y = jnp.dot(h.astype(wd), w_stack[t], preferred_element_type=jnp.float32)
        b, g, bt = vec_stack[t, 0], vec_stack[t, 1], vec_stack[t, 2]
        if t == 0:
            h = jnp.maximum(y + b, 0.0)
        elif t < T - 1:
            y = y + b                      # kernel skips this; BN's mean subtraction cancels it
            mean = jnp.mean(y, axis=0, keepdims=True)
            var = jnp.mean((y - mean) ** 2, axis=0, keepdims=True)
            h = jnp.maximum((y - mean) * jax.lax.rsqrt(var + BN_EPS) * g + bt, 0.0)
        else:
            h = y + b
    return h[:, :D_OUT]


# ----------------------------- main ------------------------------------------

if __name__ == "__main__":
    num_layers = 3
    batch = 16   # demo size; use >=128 (v5e) / >=256 (v6e/v7x) rows per call to load the MXU

    key = jax.random.PRNGKey(0)
    k_params, k_x = jax.random.split(key)

    params = init_flexible_mlp_params(k_params, num_layers)
    x = jax.random.normal(k_x, (batch, D_IN), jnp.float32)

    ref = reference_forward(params, x)

    # Path 1: weight-resident single-invocation kernel (auto-selected for shallow nets).
    out = jax.block_until_ready(flexible_mlp_forward(params, x))
    assert out.shape == (batch, D_OUT)
    assert out.dtype == jnp.float32
    assert jnp.allclose(out, ref, rtol=1e-2, atol=1e-2)

    # Path 2: streamed per-layer kernel (deep-net fallback) -- validate it too.
    out_s = jax.block_until_ready(flexible_mlp_forward(params, x, force_streamed=True))
    assert out_s.shape == (batch, D_OUT)
    assert out_s.dtype == jnp.float32
    assert jnp.allclose(out_s, ref, rtol=1e-2, atol=1e-2)

    print("KERNEL_OK")
</pallas_src>

<mosaic_0001>
module attributes {stable_mosaic.version = 11 : i64} {
  func.func @_mlp_resident_kernel(%arg0: memref<16x50xf32, #tpu.memory_space<vmem>>, %arg1: memref<4x512x512xbf16, #tpu.memory_space<vmem>>, %arg2: memref<4x3x512xf32, #tpu.memory_space<vmem>>, %arg3: memref<16x128xf32, #tpu.memory_space<vmem>>, %arg4: memref<16x512xf32, #tpu.memory_space<vmem>>) attributes {dimension_semantics = [], scalar_prefetch = 0 : i64, scratch_operands = 1 : i64, tpu.core_type = #tpu.core_type<tc>} {
    %cst = arith.constant 0.000000e+00 : f32
    %0 = vector.broadcast %cst : f32 to vector<16x512xf32>
    %c0 = arith.constant 0 : index
    %c0_0 = arith.constant 0 : index
    %1 = vector.load %arg4[%c0, %c0_0] : memref<16x512xf32, #tpu.memory_space<vmem>>, vector<16x512xf32>
    tpu.vector_store %arg4[%c0, %c0_0], %0 {strides = array<i32>} : memref<16x512xf32, #tpu.memory_space<vmem>>, vector<16x512xf32>,
    %c0_1 = arith.constant 0 : index
    %c0_2 = arith.constant 0 : index
    %2 = vector.load %arg0[%c0_1, %c0_2] : memref<16x50xf32, #tpu.memory_space<vmem>>, vector<16x50xf32>
    %c0_3 = arith.constant 0 : index
    %c0_4 = arith.constant 0 : index
    %3 = vector.load %arg4[%c0_3, %c0_4] : memref<16x512xf32, #tpu.memory_space<vmem>>, vector<16x50xf32>
    tpu.vector_store %arg4[%c0_3, %c0_4], %2 {strides = array<i32>} : memref<16x512xf32, #tpu.memory_space<vmem>>, vector<16x50xf32>,
    %c0_5 = arith.constant 0 : index
    %c0_6 = arith.constant 0 : index
    %c0_7 = arith.constant 0 : index
    %4 = vector.load %arg2[%c0_5, %c0_6, %c0_7] : memref<4x3x512xf32, #tpu.memory_space<vmem>>, vector<1x3x512xf32>
    %5 = vector.shape_cast %4 : vector<1x3x512xf32> to vector<3x512xf32>
    %c0_8 = arith.constant 0 : index
    %c0_9 = arith.constant 0 : index
    %6 = vector.load %arg4[%c0_8, %c0_9] : memref<16x512xf32, #tpu.memory_space<vmem>>, vector<16x512xf32>
    %7 = arith.truncf %6 : vector<16x512xf32> to vector<16x512xbf16>
    %c0_10 = arith.constant 0 : index
    %c0_11 = arith.constant 0 : index
    %c0_12 = arith.constant 0 : index
    %8 = vector.load %arg1[%c0_10, %c0_11, %c0_12] : memref<4x512x512xbf16, #tpu.memory_space<vmem>>, vector<1x512x512xbf16>
    %9 = vector.shape_cast %8 : vector<1x512x512xbf16> to vector<512x512xbf16>
    %cst_13 = arith.constant dense<0.000000e+00> : vector<16x512xf32>
    %10 = tpu.matmul %7, %9, %cst_13 {dimension_numbers = #tpu.dot_dimension_numbers<[1], [0], [0], [1], [0, 0, 1, 1], [], []>} : vector<16x512xbf16>, vector<512x512xbf16>, vector<16x512xf32> -> vector<16x512xf32>
    %11 = vector.extract_strided_slice %5 {offsets = [0, 0], sizes = [1, 512], strides = [1, 1]} : vector<3x512xf32> to vector<1x512xf32>
    %12 = vector.broadcast %11 : vector<1x512xf32> to vector<16x512xf32>
    %13 = arith.addf %10, %12 : vector<16x512xf32>
    %cst_14 = arith.constant 0.000000e+00 : f32
    %14 = vector.broadcast %cst_14 : f32 to vector<16x512xf32>
    %15 = arith.maximumf %13, %14 : vector<16x512xf32>
    %c1_i32 = arith.constant 1 : i32
    %c2_i32 = arith.constant 2 : i32
    %16 = arith.addi %c1_i32, %c2_i32 : i32
    %c1_i32_15 = arith.constant 1 : i32
    %17 = scf.for %arg5 = %c1_i32 to %16 step %c1_i32_15 iter_args(%arg6 = %15) -> (vector<16x512xf32>)  : i32 {
      %29 = arith.truncf %arg6 : vector<16x512xf32> to vector<16x512xbf16>
      %30 = arith.index_cast %arg5 : i32 to index
      %c0_25 = arith.constant 0 : index
      %c0_26 = arith.constant 0 : index
      %31 = vector.load %arg1[%30, %c0_25, %c0_26] : memref<4x512x512xbf16, #tpu.memory_space<vmem>>, vector<1x512x512xbf16>
      %32 = vector.shape_cast %31 : vector<1x512x512xbf16> to vector<512x512xbf16>
      %cst_27 = arith.constant dense<0.000000e+00> : vector<16x512xf32>
      %33 = tpu.matmul %29, %32, %cst_27 {dimension_numbers = #tpu.dot_dimension_numbers<[1], [0], [0], [1], [0, 0, 1, 1], [], []>} : vector<16x512xbf16>, vector<512x512xbf16>, vector<16x512xf32> -> vector<16x512xf32>
      %cst_28 = arith.constant dense<0.000000e+00> : vector<512xf32>
      %34 = vector.multi_reduction <add>, %33, %cst_28 [0] : vector<16x512xf32> to vector<512xf32>
      %35 = vector.shape_cast %34 : vector<512xf32> to vector<1x512xf32>
      %cst_29 = arith.constant 1.600000e+01 : f32
      %36 = vector.broadcast %cst_29 : f32 to vector<1x512xf32>
      %37 = arith.divf %35, %36 : vector<1x512xf32>
      %38 = vector.broadcast %37 : vector<1x512xf32> to vector<16x512xf32>
      %39 = arith.subf %33, %38 : vector<16x512xf32>
      %40 = arith.mulf %39, %39 : vector<16x512xf32>
      %cst_30 = arith.constant dense<0.000000e+00> : vector<512xf32>
      %41 = vector.multi_reduction <add>, %40, %cst_30 [0] : vector<16x512xf32> to vector<512xf32>
      %42 = vector.shape_cast %41 : vector<512xf32> to vector<1x512xf32>
      %cst_31 = arith.constant 1.600000e+01 : f32
      %43 = vector.broadcast %cst_31 : f32 to vector<1x512xf32>
      %44 = arith.divf %42, %43 : vector<1x512xf32>
      %45 = vector.broadcast %37 : vector<1x512xf32> to vector<16x512xf32>
      %46 = arith.subf %33, %45 : vector<16x512xf32>
      %cst_32 = arith.constant 9.99999974E-6 : f32
      %47 = vector.broadcast %cst_32 : f32 to vector<1x512xf32>
      %48 = arith.addf %44, %47 : vector<1x512xf32>
      %49 = math.rsqrt %48 : vector<1x512xf32>
      %50 = vector.broadcast %49 : vector<1x512xf32> to vector<16x512xf32>
      %51 = arith.mulf %46, %50 : vector<16x512xf32>
      %52 = arith.index_cast %arg5 : i32 to index
      %c0_33 = arith.constant 0 : index
      %c0_34 = arith.constant 0 : index
      %53 = vector.load %arg2[%52, %c0_33, %c0_34] : memref<4x3x512xf32, #tpu.memory_space<vmem>>, vector<1x3x512xf32>
      %54 = vector.shape_cast %53 : vector<1x3x512xf32> to vector<3x512xf32>
      %55 = vector.extract_strided_slice %54 {offsets = [1, 0], sizes = [1, 512], strides = [1, 1]} : vector<3x512xf32> to vector<1x512xf32>
      %56 = vector.broadcast %55 : vector<1x512xf32> to vector<16x512xf32>
      %57 = arith.mulf %51, %56 : vector<16x512xf32>
      %58 = vector.extract_strided_slice %54 {offsets = [2, 0], sizes = [1, 512], strides = [1, 1]} : vector<3x512xf32> to vector<1x512xf32>
      %59 = vector.broadcast %58 : vector<1x512xf32> to vector<16x512xf32>
      %60 = arith.addf %57, %59 : vector<16x512xf32>
      %cst_35 = arith.constant 0.000000e+00 : f32
      %61 = vector.broadcast %cst_35 : f32 to vector<16x512xf32>
      %62 = arith.maximumf %60, %61 : vector<16x512xf32>
      scf.yield %62 : vector<16x512xf32>
    }
    %c2_i32_16 = arith.constant 2 : i32
    %c3 = arith.constant 3 : index
    %c0_17 = arith.constant 0 : index
    %c0_18 = arith.constant 0 : index
    %18 = vector.load %arg2[%c3, %c0_17, %c0_18] : memref<4x3x512xf32, #tpu.memory_space<vmem>>, vector<1x3x512xf32>
    %19 = vector.shape_cast %18 : vector<1x3x512xf32> to vector<3x512xf32>
    %20 = arith.truncf %17 : vector<16x512xf32> to vector<16x512xbf16>
    %c3_19 = arith.constant 3 : index
    %c0_20 = arith.constant 0 : index
    %c0_21 = arith.constant 0 : index
    %21 = vector.load %arg1[%c3_19, %c0_20, %c0_21] : memref<4x512x512xbf16, #tpu.memory_space<vmem>>, vector<1x512x512xbf16>
    %22 = vector.shape_cast %21 : vector<1x512x512xbf16> to vector<512x512xbf16>
    %cst_22 = arith.constant dense<0.000000e+00> : vector<16x512xf32>
    %23 = tpu.matmul %20, %22, %cst_22 {dimension_numbers = #tpu.dot_dimension_numbers<[1], [0], [0], [1], [0, 0, 1, 1], [], []>} : vector<16x512xbf16>, vector<512x512xbf16>, vector<16x512xf32> -> vector<16x512xf32>
    %24 = vector.extract_strided_slice %23 {offsets = [0, 0], sizes = [16, 128], strides = [1, 1]} : vector<16x512xf32> to vector<16x128xf32>
    %25 = vector.extract_strided_slice %19 {offsets = [0, 0], sizes = [1, 128], strides = [1, 1]} : vector<3x512xf32> to vector<1x128xf32>
    %26 = vector.broadcast %25 : vector<1x128xf32> to vector<16x128xf32>
    %27 = arith.addf %24, %26 : vector<16x128xf32>
    %c0_23 = arith.constant 0 : index
    %c0_24 = arith.constant 0 : index
    %28 = vector.load %arg3[%c0_23, %c0_24] : memref<16x128xf32, #tpu.memory_space<vmem>>, vector<16x128xf32>
    tpu.vector_store %arg3[%c0_23, %c0_24], %27 {strides = array<i32>} : memref<16x128xf32, #tpu.memory_space<vmem>>, vector<16x128xf32>,
    return
  }
}

</mosaic_0001>

<bundles_post_ra>
// kernel: flexible_mlp_forward.1
= control target key start
LH: loop header
LB: loop body
LE: loop exit
PB: predicated region body
PF: predicated region fallthrough
CT: control target
= control target key end

     0   :  { %8 = vsyncpa [#allocation4], 0  ;;  %s4184_s0 = inlined_call_operand.hbm [shape: f32[16,50], index: 0, kind: input, shape index: {}]   ;;  %s4185_s1 = inlined_call_operand.hbm [shape: bf16[4,512,512], index: 1, kind: input, shape index: {}]   ;;  %s4186_s2 = inlined_call_operand.vmem [shape: f32[4,3,512], index: 2, kind: input, shape index: {}]   ;;  %s4187_s3 = inlined_call_operand.hbm [shape: f32[16,128], index: 3, kind: output, shape index: {}]  }
   0x1   :  { %9 = vsyncpa [#allocation7], 0 }
   0x2   :  { %10 = vsyncpa [#allocation5], 0  ;;  %s3812_s12 = smov [#allocation3]   ;;  %s3668_s16 = scalar_lea.hbm %s4184_s0, 256 }
   0x3   :  { %s16_s13 = sshll.u32 %s3812_s12, 4  ;;  %p3669_p0 = scmp.ne.s32.totalorder %s4184_s0, %s3668_s16  ;;  %s17_s13 = int_to_ptr.vmem [resolvable:$true] %s16_s13 }
   0x4   :  { %p3672_p1 = scmp.lt.u32.totalorder %s3668_s16, %s4184_s0 }
   0x6   :  { %p3674_p2 = pnand %p3672_p1, %p3669_p0 }
   0x8   :  { %3677 = shalt.err (!%p3674_p2)
}
   0x9   :  { %s3678_s21 = scalar_lea.vmem %s17_s13, 256  ;;  %p3683_p4 = scmp.lt.s32.totalorder %s17_s13, %s17_s13 }
   0xa   :  { %p3679_p3 = scmp.ne.s32.totalorder %s17_s13, %s3678_s21  ;;  %p3684_p5 = scmp.lt.s32.totalorder %s3678_s21, %s3678_s21 }
   0xc   :  { %p3685_p6 = por %p3684_p5, %p3683_p4 }
   0xe   :  { %p3686_p7 = pnand %p3685_p6, %p3679_p3 }
  0x10   :  { %3689 = shalt.err (!%p3686_p7)
}
  0x11   :  { %s3813_s22 = smov 128   ;;  %s3814_s23 = smov 8  }
  0x12   :  { %22 = dma.hbm_to_vmem [thread:$0]  %s4184_s0, 256, %s17_s13, [#allocation4], %s3813_s22, %s3813_s22, %s3814_s23  }
  0x13   :  { %s3815_s26 = smov [#allocation6]   ;;  %s3690_s30 = scalar_lea.hbm %s4185_s1, 65536 }
  0x14   :  { %s28_s27 = sshll.u32 %s3815_s26, 4  ;;  %p3691_p8 = scmp.ne.s32.totalorder %s4185_s1, %s3690_s30  ;;  %s29_s27 = int_to_ptr.vmem [resolvable:$true] %s28_s27 }
  0x15   :  { %p3694_p9 = scmp.lt.u32.totalorder %s3690_s30, %s4185_s1 }
  0x17   :  { %p3696_p10 = pnand %p3694_p9, %p3691_p8 }
  0x19   :  { %3699 = shalt.err (!%p3696_p10)
}
  0x1a   :  { %s3700_s8 = scalar_lea.vmem %s29_s27, 65536  ;;  %p3705_p12 = scmp.lt.s32.totalorder %s29_s27, %s29_s27 }
  0x1b   :  { %p3701_p11 = scmp.ne.s32.totalorder %s29_s27, %s3700_s8  ;;  %p3706_p13 = scmp.lt.s32.totalorder %s3700_s8, %s3700_s8 }
  0x1d   :  { %p3707_p0 = por %p3706_p13, %p3705_p12 }
  0x1f   :  { %p3708_p1 = pnand %p3707_p0, %p3701_p11 }
  0x21   :  { %3711 = shalt.err (!%p3708_p1)
}
  0x22   :  { %s3816_s0 = smov 256   ;;  %s3817_s9 = smov 16  }
  0x23   :  { %34 = dma.hbm_to_vmem [thread:$0]  %s4185_s1, 65536, %s29_s27, [#allocation7], %s3816_s0, %s3816_s0, %s3817_s9  }
  0x24   :  { %3770 = dma.done.wait [#allocation4], 256  }
  0x25   :  { %3771 = vsyncadd [#allocation4], 4294967040 }
  0x26   :  { %3772 = dma.done.wait [#allocation7], 65536  }
  0x27   :  { %3773 = vsyncadd [#allocation7], 4294901760  ;;  %v3818_v0 = vmov 0.0   ;;  %v3819_v1 = vmov 0.0|0.0   ;;  %v3180_v2 = vld [vmem:[#allocation6 + $0x4] ss:$16 sps:$4 sm:$0xff]  }
  0x28   :  { %43 = vst [vmem:[#allocation2] sm:$0xff] %v3818_v0  ;;  %47 = vst [vmem:[#allocation2 + $0x20] sm:$0xff] %v3818_v0  ;;  %908 = vmatprep.mubr.bf16.mxu0 %v3819_v1  ;;  %994 = vmatprep.mubr.bf16.mxu1 %v3819_v1  ;;  %v3182_v3 = vld [vmem:[#allocation6 + $0xc] ss:$16 sps:$4 sm:$0xff]   ;;  %v3184_v4 = vld [vmem:[#allocation6] ss:$16 sps:$4 sm:$0xff]  }
  0x29   :  { %876 = vmatprep.subr.bf16.mxu0 %v3180_v2  ;;  %v3185_v5 = vld [vmem:[#allocation6 + $0x8] ss:$16 sps:$4 sm:$0xff]   ;;  %962 = vmatprep.subr.bf16.mxu1 %v3182_v3  ;;  %v3186_v6 = vld [vmem:[#allocation6 + $0x24] ss:$16 sps:$4 sm:$0xff]   ;;  %v3188_v7 = vld [vmem:[#allocation6 + $0x2c] ss:$16 sps:$4 sm:$0xff]  }
  0x2a   :  { %877 = vmatpush1.bf16.msra.mxu0 %v3184_v4  ;;  %963 = vmatpush1.bf16.msra.mxu1 %v3185_v5  ;;  %v3190_v8 = vld [vmem:[#allocation6 + $0x20] ss:$16 sps:$4 sm:$0xff]   ;;  %v3191_v9 = vld [vmem:[#allocation6 + $0x28] ss:$16 sps:$4 sm:$0xff]   ;;  %v3192_v10 = vld [vmem:[#allocation6 + $0x44] ss:$16 sps:$4 sm:$0xff]  }
  0x2b   :  { %878 = vmatprep.subr.bf16.mxu0 %v3186_v6  ;;  %964 = vmatprep.subr.bf16.mxu1 %v3188_v7  ;;  %v3194_v11 = vld [vmem:[#allocation6 + $0x4c] ss:$16 sps:$4 sm:$0xff]   ;;  %v3196_v12 = vld [vmem:[#allocation6 + $0x40] ss:$16 sps:$4 sm:$0xff]   ;;  %v3197_v13 = vld [vmem:[#allocation6 + $0x48] ss:$16 sps:$4 sm:$0xff]  }
  0x2c   :  { %v3198_v14 = vld [vmem:[#allocation6 + $0x64] ss:$16 sps:$4 sm:$0xff]   ;;  %v3200_v15 = vld [vmem:[#allocation6 + $0x6c] ss:$16 sps:$4 sm:$0xff]   ;;  %v3202_v16 = vld [vmem:[#allocation6 + $0x60] ss:$16 sps:$4 sm:$0xff]  }
  0x2d   :  { %v3203_v17 = vld [vmem:[#allocation6 + $0x68] ss:$16 sps:$4 sm:$0xff]   ;;  %v3204_v18 = vld [vmem:[#allocation6 + $0x84] ss:$16 sps:$4 sm:$0xff]   ;;  %v3206_v19 = vld [vmem:[#allocation6 + $0x8c] ss:$16 sps:$4 sm:$0xff]  }
  0x2e   :  { %879 = vmatpush1.bf16.msra.mxu0 %v3190_v8  ;;  %965 = vmatpush1.bf16.msra.mxu1 %v3191_v9  ;;  %v3208_v20 = vld [vmem:[#allocation6 + $0x80] ss:$16 sps:$4 sm:$0xff]   ;;  %v3209_v21 = vld [vmem:[#allocation6 + $0x88] ss:$16 sps:$4 sm:$0xff]   ;;  %v3210_v22 = vld [vmem:[#allocation6 + $0xa4] ss:$16 sps:$4 sm:$0xff]  }
  0x2f   :  { %880 = vmatprep.subr.bf16.mxu0 %v3192_v10  ;;  %966 = vmatprep.subr.bf16.mxu1 %v3194_v11  ;;  %v3212_v23 = vld [vmem:[#allocation6 + $0xac] ss:$16 sps:$4 sm:$0xff]   ;;  %v3214_v24 = vld [vmem:[#allocation6 + $0xa0] ss:$16 sps:$4 sm:$0xff]   ;;  %v3215_v25 = vld [vmem:[#allocation6 + $0xa8] ss:$16 sps:$4 sm:$0xff]  }
  0x30   :  { %v3216_v26 = vld [vmem:[#allocation6 + $0xc4] ss:$16 sps:$4 sm:$0xff]   ;;  %v3218_v27 = vld [vmem:[#allocation6 + $0xcc] ss:$16 sps:$4 sm:$0xff]   ;;  %v3220_v28 = vld [vmem:[#allocation6 + $0xc0] ss:$16 sps:$4 sm:$0xff]  }
  0x31   :  { %v3221_v29 = vld [vmem:[#allocation6 + $0xc8] ss:$16 sps:$4 sm:$0xff]   ;;  %v3222_v30 = vld [vmem:[#allocation6 + $0xe4] ss:$16 sps:$4 sm:$0xff]   ;;  %v3224_v31 = vld [vmem:[#allocation6 + $0xec] ss:$16 sps:$4 sm:$0xff]  }
  0x32   :  { %881 = vmatpush1.bf16.msra.mxu0 %v3196_v12  ;;  %967 = vmatpush1.bf16.msra.mxu1 %v3197_v13  ;;  %v3226_v32 = vld [vmem:[#allocation6 + $0xe0] ss:$16 sps:$4 sm:$0xff]   ;;  %v3227_v33 = vld [vmem:[#allocation6 + $0xe8] ss:$16 sps:$4 sm:$0xff]   ;;  %v3228_v34 = vld [vmem:[#allocation6 + $0x104] ss:$16 sps:$4 sm:$0xff]  }
  0x33   :  { %882 = vmatprep.subr.bf16.mxu0 %v3198_v14  ;;  %968 = vmatprep.subr.bf16.mxu1 %v3200_v15  ;;  %v3230_v35 = vld [vmem:[#allocation6 + $0x10c] ss:$16 sps:$4 sm:$0xff]   ;;  %v3232_v36 = vld [vmem:[#allocation6 + $0x100] ss:$16 sps:$4 sm:$0xff]   ;;  %v3233_v37 = vld [vmem:[#allocation6 + $0x108] ss:$16 sps:$4 sm:$0xff]  }
  0x34   :  { %v3234_v38 = vld [vmem:[#allocation6 + $0x124] ss:$16 sps:$4 sm:$0xff]   ;;  %v3236_v39 = vld [vmem:[#allocation6 + $0x12c] ss:$16 sps:$4 sm:$0xff]   ;;  %v3238_v40 = vld [vmem:[#allocation6 + $0x120] ss:$16 sps:$4 sm:$0xff]  }
  0x35   :  { %v3239_v41 = vld [vmem:[#allocation6 + $0x128] ss:$16 sps:$4 sm:$0xff]   ;;  %v3240_v42 = vld [vmem:[#allocation6 + $0x144] ss:$16 sps:$4 sm:$0xff]   ;;  %v3242_v43 = vld [vmem:[#allocation6 + $0x14c] ss:$16 sps:$4 sm:$0xff]  }
  0x36   :  { %883 = vmatpush1.bf16.msra.mxu0 %v3202_v16  ;;  %969 = vmatpush1.bf16.msra.mxu1 %v3203_v17  ;;  %v3244_v44 = vld [vmem:[#allocation6 + $0x140] ss:$16 sps:$4 sm:$0xff]   ;;  %v3245_v45 = vld [vmem:[#allocation6 + $0x148] ss:$16 sps:$4 sm:$0xff]   ;;  %v3246_v46 = vld [vmem:[#allocation6 + $0x164] ss:$16 sps:$4 sm:$0xff]  }
  0x37   :  { %884 = vmatprep.subr.bf16.mxu0 %v3204_v18  ;;  %970 = vmatprep.subr.bf16.mxu1 %v3206_v19  ;;  %v3248_v47 = vld [vmem:[#allocation6 + $0x16c] ss:$16 sps:$4 sm:$0xff]   ;;  %v3250_v48 = vld [vmem:[#allocation6 + $0x160] ss:$16 sps:$4 sm:$0xff]   ;;  %v3251_v49 = vld [vmem:[#allocation6 + $0x168] ss:$16 sps:$4 sm:$0xff]  }
  0x38   :  { %vm53_vm0 = vcmask 408576   ;;  %v3252_v50 = vld [vmem:[#allocation6 + $0x184] ss:$16 sps:$4 sm:$0xff]   ;;  %v3254_v51 = vld [vmem:[#allocation6 + $0x18c] ss:$16 sps:$4 sm:$0xff]   ;;  %s3908_s15 = smov 1  }
  0x39   :  { %v51_v52 = vld [vmem:[#allocation3] sm:$0xff]  ;;  %v52_v53 = vld [vmem:[#allocation3 + $0x8] sm:$0xff] }
  0x3a   :  { %885 = vmatpush1.bf16.msra.mxu0 %v3208_v20  ;;  %971 = vmatpush1.bf16.msra.mxu1 %v3209_v21  ;;  %54 = vst.msk [vmem:[#allocation2] sm:$0xff] %vm53_vm0, %v51_v52  ;;  %55 = vst.msk [vmem:[#allocation2 + $0x20] sm:$0xff] %vm53_vm0, %v52_v53  ;;  %v3256_v54 = vld [vmem:[#allocation6 + $0x180] ss:$16 sps:$4 sm:$0xff]   ;;  %v3257_v55 = vld [vmem:[#allocation6 + $0x188] ss:$16 sps:$4 sm:$0xff]  }
  0x3b   :  { %886 = vmatprep.subr.bf16.mxu0 %v3210_v22  ;;  %972 = vmatprep.subr.bf16.mxu1 %v3212_v23  ;;  %v3258_v56 = vld [vmem:[#allocation6 + $0x1a4] ss:$16 sps:$4 sm:$0xff]   ;;  %v3260_v57 = vld [vmem:[#allocation6 + $0x1ac] ss:$16 sps:$4 sm:$0xff]   ;;  %v3262_v58 = vld [vmem:[#allocation6 + $0x1a0] ss:$16 sps:$4 sm:$0xff]  }
  0x3c   :  { %v3263_v59 = vld [vmem:[#allocation6 + $0x1a8] ss:$16 sps:$4 sm:$0xff]   ;;  %v3264_v60 = vld [vmem:[#allocation6 + $0x1c4] ss:$16 sps:$4 sm:$0xff]   ;;  %v3266_v61 = vld [vmem:[#allocation6 + $0x1cc] ss:$16 sps:$4 sm:$0xff]  }
  0x3d   :  { %v3268_v62 = vld [vmem:[#allocation6 + $0x1c0] ss:$16 sps:$4 sm:$0xff]   ;;  %v3269_v63 = vld [vmem:[#allocation6 + $0x1c8] ss:$16 sps:$4 sm:$0xff]   ;;  %v3270_v0 = vld [vmem:[#allocation6 + $0x1e4] ss:$16 sps:$4 sm:$0xff]  }
  0x3e   :  { %887 = vmatpush1.bf16.msra.mxu0 %v3214_v24  ;;  %973 = vmatpush1.bf16.msra.mxu1 %v3215_v25  ;;  %v3272_v2 = vld [vmem:[#allocation6 + $0x1ec] ss:$16 sps:$4 sm:$0xff]   ;;  %v3274_v3 = vld [vmem:[#allocation6 + $0x1e0] ss:$16 sps:$4 sm:$0xff]   ;;  %v3275_v4 = vld [vmem:[#allocation6 + $0x1e8] ss:$16 sps:$4 sm:$0xff]  }
  0x3f   :  { %888 = vmatprep.subr.bf16.mxu0 %v3216_v26  ;;  %974 = vmatprep.subr.bf16.mxu1 %v3218_v27  ;;  %v3278_v5 = vld [vmem:[#allocation6 + $0x204] ss:$16 sps:$4 sm:$0xff]   ;;  %v3281_v8 = vld [vmem:[#allocation6 + $0x20c] ss:$16 sps:$4 sm:$0xff]   ;;  %v3276_v9 = vld [vmem:[#allocation6 + $0x200] ss:$16 sps:$4 sm:$0xff]  }
  0x40   :  { %v3279_v10 = vld [vmem:[#allocation6 + $0x208] ss:$16 sps:$4 sm:$0xff]   ;;  %v3284_v12 = vld [vmem:[#allocation6 + $0x224] ss:$16 sps:$4 sm:$0xff]   ;;  %v3287_v13 = vld [vmem:[#allocation6 + $0x22c] ss:$16 sps:$4 sm:$0xff]  }
  0x41   :  { %v58_v6 = vld [vmem:[#allocation2] sm:$0xff]  ;;  %v3285_v15 = vld [vmem:[#allocation6 + $0x228] ss:$16 sps:$4 sm:$0xff]   ;;  %v3293_v17 = vld [vmem:[#allocation6 + $0x24c] ss:$16 sps:$4 sm:$0xff]  }
  0x42   :  { %889 = vmatpush1.bf16.msra.mxu0 %v3220_v28  ;;  %975 = vmatpush1.bf16.msra.mxu1 %v3221_v29  ;;  %v62_v7 = vld [vmem:[#allocation2 + $0x20] sm:$0xff]  ;;  %v3291_v19 = vld [vmem:[#allocation6 + $0x248] ss:$16 sps:$4 sm:$0xff]   ;;  %v3299_v21 = vld [vmem:[#allocation6 + $0x26c] ss:$16 sps:$4 sm:$0xff]  }
  0x43   :  { %890 = vmatprep.subr.bf16.mxu0 %v3222_v30  ;;  %976 = vmatprep.subr.bf16.mxu1 %v3224_v31  ;;  %v66_v11 = vpack.c.bf16 %v62_v7, %v58_v6  ;;  %v3282_v14 = vld [vmem:[#allocation6 + $0x220] ss:$16 sps:$4 sm:$0xff]   ;;  %v3290_v16 = vld [vmem:[#allocation6 + $0x244] ss:$16 sps:$4 sm:$0xff]   ;;  %v3297_v23 = vld [vmem:[#allocation6 + $0x268] ss:$16 sps:$4 sm:$0xff]  }
  0x44   :  { %v3288_v18 = vld [vmem:[#allocation6 + $0x240] ss:$16 sps:$4 sm:$0xff]   ;;  %v3296_v20 = vld [vmem:[#allocation6 + $0x264] ss:$16 sps:$4 sm:$0xff]   ;;  %v3305_v25 = vld [vmem:[#allocation6 + $0x28c] ss:$16 sps:$4 sm:$0xff]  }
  0x45   :  { %v3294_v22 = vld [vmem:[#allocation6 + $0x260] ss:$16 sps:$4 sm:$0xff]   ;;  %v3302_v24 = vld [vmem:[#allocation6 + $0x284] ss:$16 sps:$4 sm:$0xff]   ;;  %v3303_v27 = vld [vmem:[#allocation6 + $0x288] ss:$16 sps:$4 sm:$0xff]  }
  0x46   :  { %891 = vmatpush1.bf16.msra.mxu0 %v3226_v32  ;;  %977 = vmatpush1.bf16.msra.mxu1 %v3227_v33  ;;  %v3300_v26 = vld [vmem:[#allocation6 + $0x280] ss:$16 sps:$4 sm:$0xff]   ;;  %v3308_v28 = vld [vmem:[#allocation6 + $0x2a4] ss:$16 sps:$4 sm:$0xff]   ;;  %v3311_v29 = vld [vmem:[#allocation6 + $0x2ac] ss:$16 sps:$4 sm:$0xff]  }
  0x47   :  { %892 = vmatprep.subr.bf16.mxu0 %v3228_v34  ;;  %978 = vmatprep.subr.bf16.mxu1 %v3230_v35  ;;  %v3306_v30 = vld [vmem:[#allocation6 + $0x2a0] ss:$16 sps:$4 sm:$0xff]   ;;  %v3309_v31 = vld [vmem:[#allocation6 + $0x2a8] ss:$16 sps:$4 sm:$0xff]   ;;  %v3314_v32 = vld [vmem:[#allocation6 + $0x2c4] ss:$16 sps:$4 sm:$0xff]  }
  0x48   :  { %v3317_v33 = vld [vmem:[#allocation6 + $0x2cc] ss:$16 sps:$4 sm:$0xff]   ;;  %v3312_v34 = vld [vmem:[#allocation6 + $0x2c0] ss:$16 sps:$4 sm:$0xff]   ;;  %v3315_v35 = vld [vmem:[#allocation6 + $0x2c8] ss:$16 sps:$4 sm:$0xff]  }
  0x49   :  { %v3344_v52 = vld [vmem:[#allocation6 + $0x364] ss:$16 sps:$4 sm:$0xff]   ;;  %v3347_v53 = vld [vmem:[#allocation6 + $0x36c] ss:$16 sps:$4 sm:$0xff]   ;;  %v3366_v7 = vld [vmem:[#allocation6 + $0x3e0] ss:$16 sps:$4 sm:$0xff]  }
  0x4a   :  { %893 = vmatpush1.bf16.msra.mxu0 %v3232_v36  ;;  %979 = vmatpush1.bf16.msra.mxu1 %v3233_v37  ;;  %v3320_v36 = vld [vmem:[#allocation6 + $0x2e4] ss:$16 sps:$4 sm:$0xff]   ;;  %v3323_v37 = vld [vmem:[#allocation6 + $0x2ec] ss:$16 sps:$4 sm:$0xff]  }
  0x4b   :  { %894 = vmatprep.subr.bf16.mxu0 %v3234_v38  ;;  %980 = vmatprep.subr.bf16.mxu1 %v3236_v39  ;;  %v3318_v38 = vld [vmem:[#allocation6 + $0x2e0] ss:$16 sps:$4 sm:$0xff]   ;;  %v3321_v39 = vld [vmem:[#allocation6 + $0x2e8] ss:$16 sps:$4 sm:$0xff]   ;;  %v3371_v6 = vld [vmem:[#allocation6 + $0x3ec] ss:$16 sps:$4 sm:$0xff]  }
  0x4e   :  { %895 = vmatpush1.bf16.msra.mxu0 %v3238_v40  ;;  %981 = vmatpush1.bf16.msra.mxu1 %v3239_v41  ;;  %v3326_v40 = vld [vmem:[#allocation6 + $0x304] ss:$16 sps:$4 sm:$0xff]   ;;  %v3329_v41 = vld [vmem:[#allocation6 + $0x30c] ss:$16 sps:$4 sm:$0xff]  }
  0x4f   :  { %896 = vmatprep.subr.bf16.mxu0 %v3240_v42  ;;  %982 = vmatprep.subr.bf16.mxu1 %v3242_v43  ;;  %v3324_v42 = vld [vmem:[#allocation6 + $0x300] ss:$16 sps:$4 sm:$0xff]   ;;  %v3327_v43 = vld [vmem:[#allocation6 + $0x308] ss:$16 sps:$4 sm:$0xff]  }
  0x52   :  { %897 = vmatpush1.bf16.msra.mxu0 %v3244_v44  ;;  %983 = vmatpush1.bf16.msra.mxu1 %v3245_v45  ;;  %v3332_v44 = vld [vmem:[#allocation6 + $0x324] ss:$16 sps:$4 sm:$0xff]   ;;  %v3335_v45 = vld [vmem:[#allocation6 + $0x32c] ss:$16 sps:$4 sm:$0xff]  }
  0x53   :  { %898 = vmatprep.subr.bf16.mxu0 %v3246_v46  ;;  %984 = vmatprep.subr.bf16.mxu1 %v3248_v47  ;;  %v3330_v46 = vld [vmem:[#allocation6 + $0x320] ss:$16 sps:$4 sm:$0xff]   ;;  %v3333_v47 = vld [vmem:[#allocation6 + $0x328] ss:$16 sps:$4 sm:$0xff]  }
  0x56   :  { %899 = vmatpush1.bf16.msra.mxu0 %v3250_v48  ;;  %985 = vmatpush1.bf16.msra.mxu1 %v3251_v49  ;;  %v3338_v48 = vld [vmem:[#allocation6 + $0x344] ss:$16 sps:$4 sm:$0xff]   ;;  %v3341_v49 = vld [vmem:[#allocation6 + $0x34c] ss:$16 sps:$4 sm:$0xff]  }
  0x57   :  { %900 = vmatprep.subr.bf16.mxu0 %v3252_v50  ;;  %986 = vmatprep.subr.bf16.mxu1 %v3254_v51  ;;  %v3336_v50 = vld [vmem:[#allocation6 + $0x340] ss:$16 sps:$4 sm:$0xff]   ;;  %v3339_v51 = vld [vmem:[#allocation6 + $0x348] ss:$16 sps:$4 sm:$0xff]  }
  0x5a   :  { %901 = vmatpush1.bf16.msra.mxu0 %v3256_v54  ;;  %987 = vmatpush1.bf16.msra.mxu1 %v3257_v55  ;;  %v3342_v54 = vld [vmem:[#allocation6 + $0x360] ss:$16 sps:$4 sm:$0xff]   ;;  %v3345_v55 = vld [vmem:[#allocation6 + $0x368] ss:$16 sps:$4 sm:$0xff]  }
  0x5b   :  { %902 = vmatprep.subr.bf16.mxu0 %v3258_v56  ;;  %988 = vmatprep.subr.bf16.mxu1 %v3260_v57  ;;  %v3350_v56 = vld [vmem:[#allocation6 + $0x384] ss:$16 sps:$4 sm:$0xff]   ;;  %v3353_v57 = vld [vmem:[#allocation6 + $0x38c] ss:$16 sps:$4 sm:$0xff]  }
  0x5e   :  { %903 = vmatpush1.bf16.msra.mxu0 %v3262_v58  ;;  %989 = vmatpush1.bf16.msra.mxu1 %v3263_v59  ;;  %v3348_v58 = vld [vmem:[#allocation6 + $0x380] ss:$16 sps:$4 sm:$0xff]   ;;  %v3351_v59 = vld [vmem:[#allocation6 + $0x388] ss:$16 sps:$4 sm:$0xff]  }
  0x5f   :  { %904 = vmatprep.subr.bf16.mxu0 %v3264_v60  ;;  %990 = vmatprep.subr.bf16.mxu1 %v3266_v61  ;;  %v3356_v60 = vld [vmem:[#allocation6 + $0x3a4] ss:$16 sps:$4 sm:$0xff]   ;;  %v3359_v61 = vld [vmem:[#allocation6 + $0x3ac] ss:$16 sps:$4 sm:$0xff]  }
  0x62   :  { %905 = vmatpush1.bf16.msra.mxu0 %v3268_v62  ;;  %991 = vmatpush1.bf16.msra.mxu1 %v3269_v63  ;;  %v3354_v62 = vld [vmem:[#allocation6 + $0x3a0] ss:$16 sps:$4 sm:$0xff]   ;;  %v3357_v63 = vld [vmem:[#allocation6 + $0x3a8] ss:$16 sps:$4 sm:$0xff]  }
  0x63   :  { %906 = vmatprep.subr.bf16.mxu0 %v3270_v0  ;;  %992 = vmatprep.subr.bf16.mxu1 %v3272_v2  ;;  %v3362_v0 = vld [vmem:[#allocation6 + $0x3c4] ss:$16 sps:$4 sm:$0xff]   ;;  %v3365_v2 = vld [vmem:[#allocation6 + $0x3cc] ss:$16 sps:$4 sm:$0xff]  }
  0x66   :  { %907 = vmatpush1.bf16.msra.mxu0 %v3274_v3  ;;  %993 = vmatpush1.bf16.msra.mxu1 %v3275_v4  ;;  %v3360_v3 = vld [vmem:[#allocation6 + $0x3c0] ss:$16 sps:$4 sm:$0xff]   ;;  %v3363_v4 = vld [vmem:[#allocation6 + $0x3c8] ss:$16 sps:$4 sm:$0xff]  }
  0x67   :  { %919 = vmatprep.subr.bf16.mxu0 %v3278_v5  ;;  %1005 = vmatprep.subr.bf16.mxu1 %v3281_v8  ;;  %v3368_v5 = vld [vmem:[#allocation6 + $0x3e4] ss:$16 sps:$4 sm:$0xff]   ;;  %v3369_v8 = vld [vmem:[#allocation6 + $0x3e8] ss:$16 sps:$4 sm:$0xff]  }
  0x69   :  { %909 = vmatmul.mubr.bf16.vlgmr.msra.gmra.mrb[0].mxu0 %v66_v11  ;;  %995 = vmatmul.mubr.bf16.vlgmr.msra.gmra.mrb[0].mxu1 %v66_v11 }
  0x6a   :  { %920 = vmatpush1.bf16.msra.mxu0 %v3276_v9  ;;  %1006 = vmatpush1.bf16.msra.mxu1 %v3279_v10  ;;  %v200_v9 = vlaneseq }
  0x6b   :  { %921 = vmatprep.subr.bf16.mxu0 %v3284_v12  ;;  %1007 = vmatprep.subr.bf16.mxu1 %v3287_v13  ;;  %v56_v12 = vld [vmem:[%s4186_s2] sm:$0x77]  ;;  %v57_v13 = vld [vmem:[%s4186_s2 + $0x8] sm:$0x77] }
  0x6c   :  { %951 = vmatprep.mubr.bf16.mxu0 %v3819_v1  ;;  %1037 = vmatprep.mubr.bf16.mxu1 %v3819_v1  ;;  %v3874_v10 = vshrl.u32 %v200_v9, 7 }
  0x6e   :  { %922 = vmatpush1.bf16.msra.mxu0 %v3282_v14  ;;  %1008 = vmatpush1.bf16.msra.mxu1 %v3285_v15  ;;  %v3877_v11 = vsub.s32 0, %v3874_v10  ;;  %v206_v14 = vsub.s32 4, %v3874_v10 }
  0x6f   :  { %923 = vmatprep.subr.bf16.mxu0 %v3290_v16  ;;  %1009 = vmatprep.subr.bf16.mxu1 %v3293_v17 }
  0x70   :  { %v203_v15 = vrot.slane %v56_v12, %v3877_v11  ;;  %v207_v16 = vrot.slane %v56_v12, %v206_v14  ;;  %v215_v17 = vrot.slane %v57_v13, %v206_v14 }
  0x72   :  { %924 = vmatpush1.bf16.msra.mxu0 %v3288_v18  ;;  %1010 = vmatpush1.bf16.msra.mxu1 %v3291_v19  ;;  %v223_v18 = vrot.slane %v203_v15, %v3877_v11 }
  0x73   :  { %925 = vmatprep.subr.bf16.mxu0 %v3296_v20  ;;  %1011 = vmatprep.subr.bf16.mxu1 %v3299_v21  ;;  %v227_v20 = vrot.slane %v207_v16, %v3877_v11  ;;  %v235_v21 = vrot.slane %v215_v17, %v3877_v11 }
  0x76   :  { %926 = vmatpush1.bf16.msra.mxu0 %v3294_v22  ;;  %1012 = vmatpush1.bf16.msra.mxu1 %v3297_v23 }
  0x77   :  { %927 = vmatprep.subr.bf16.mxu0 %v3302_v24  ;;  %1013 = vmatprep.subr.bf16.mxu1 %v3305_v25 }
  0x7a   :  { %928 = vmatpush1.bf16.msra.mxu0 %v3300_v26  ;;  %1014 = vmatpush1.bf16.msra.mxu1 %v3303_v27 }
  0x7b   :  { %929 = vmatprep.subr.bf16.mxu0 %v3308_v28  ;;  %1015 = vmatprep.subr.bf16.mxu1 %v3311_v29 }
  0x7e   :  { %930 = vmatpush1.bf16.msra.mxu0 %v3306_v30  ;;  %1016 = vmatpush1.bf16.msra.mxu1 %v3309_v31 }
  0x7f   :  { %931 = vmatprep.subr.bf16.mxu0 %v3314_v32  ;;  %1017 = vmatprep.subr.bf16.mxu1 %v3317_v33 }
  0x82   :  { %932 = vmatpush1.bf16.msra.mxu0 %v3312_v34  ;;  %1018 = vmatpush1.bf16.msra.mxu1 %v3315_v35 }
  0x83   :  { %933 = vmatprep.subr.bf16.mxu0 %v3320_v36  ;;  %1019 = vmatprep.subr.bf16.mxu1 %v3323_v37 }
  0x86   :  { %934 = vmatpush1.bf16.msra.mxu0 %v3318_v38  ;;  %1020 = vmatpush1.bf16.msra.mxu1 %v3321_v39 }
  0x87   :  { %935 = vmatprep.subr.bf16.mxu0 %v3326_v40  ;;  %1021 = vmatprep.subr.bf16.mxu1 %v3329_v41 }
  0x8a   :  { %936 = vmatpush1.bf16.msra.mxu0 %v3324_v42  ;;  %1022 = vmatpush1.bf16.msra.mxu1 %v3327_v43 }
  0x8b   :  { %937 = vmatprep.subr.bf16.mxu0 %v3332_v44  ;;  %1023 = vmatprep.subr.bf16.mxu1 %v3335_v45 }
  0x8e   :  { %938 = vmatpush1.bf16.msra.mxu0 %v3330_v46  ;;  %1024 = vmatpush1.bf16.msra.mxu1 %v3333_v47 }
  0x8f   :  { %939 = vmatprep.subr.bf16.mxu0 %v3338_v48  ;;  %1025 = vmatprep.subr.bf16.mxu1 %v3341_v49 }
  0x92   :  { %940 = vmatpush1.bf16.msra.mxu0 %v3336_v50  ;;  %1026 = vmatpush1.bf16.msra.mxu1 %v3339_v51 }
  0x93   :  { %941 = vmatprep.subr.bf16.mxu0 %v3344_v52  ;;  %1027 = vmatprep.subr.bf16.mxu1 %v3347_v53 }
  0x96   :  { %942 = vmatpush1.bf16.msra.mxu0 %v3342_v54  ;;  %1028 = vmatpush1.bf16.msra.mxu1 %v3345_v55 }
  0x97   :  { %943 = vmatprep.subr.bf16.mxu0 %v3350_v56  ;;  %1029 = vmatprep.subr.bf16.mxu1 %v3353_v57 }
  0x9a   :  { %944 = vmatpush1.bf16.msra.mxu0 %v3348_v58  ;;  %1030 = vmatpush1.bf16.msra.mxu1 %v3351_v59 }
  0x9b   :  { %945 = vmatprep.subr.bf16.mxu0 %v3356_v60  ;;  %1031 = vmatprep.subr.bf16.mxu1 %v3359_v61 }
  0x9e   :  { %946 = vmatpush1.bf16.msra.mxu0 %v3354_v62  ;;  %1032 = vmatpush1.bf16.msra.mxu1 %v3357_v63 }
  0x9f   :  { %947 = vmatprep.subr.bf16.mxu0 %v3362_v0  ;;  %1033 = vmatprep.subr.bf16.mxu1 %v3365_v2 }
  0xa2   :  { %948 = vmatpush1.bf16.msra.mxu0 %v3360_v3  ;;  %1034 = vmatpush1.bf16.msra.mxu1 %v3363_v4 }
  0xa3   :  { %949 = vmatprep.subr.bf16.mxu0 %v3368_v5  ;;  %1035 = vmatprep.subr.bf16.mxu1 %v3371_v6 }
  0xa6   :  { %950 = vmatpush1.bf16.msra.mxu0 %v3366_v7  ;;  %1036 = vmatpush1.bf16.msra.mxu1 %v3369_v8 }
  0xa9   :  { %952 = vmatmul.mubr.bf16.vlgmr.msra.gmra.mrb[0].mxu0 %v3819_v1  ;;  %1038 = vmatmul.mubr.bf16.vlgmr.msra.gmra.mrb[0].mxu1 %v3819_v1  ;;  %v211_v1 = vrot.slane %v57_v13, %v3877_v11 }
  0xab   :  { %v231_v19 = vrot.slane %v211_v1, %v3877_v11 }
 0x17c   :  { %v953_v22 = vpop.f32.mrb[0].mxu0  ;;  %v1039_v23 = vpop.f32.mrb[0].mxu1 }
 0x17d   :  { %v3076_v24 = vadd.f32 %v953_v22, %v223_v18  ;;  %v3080_v25 = vadd.f32 %v1039_v23, %v231_v19  ;;  %v955_v26 = vpop.f32.mrb[1].mxu0  ;;  %v1041_v27 = vpop.f32.mrb[1].mxu1 }
 0x17e   :  { %v3077_v28 = vadd.f32 %v955_v26, %v227_v20  ;;  %v3081_v29 = vadd.f32 %v1041_v27, %v235_v21  ;;  %v957_v30 = vpop.f32.mrb[2].mxu0  ;;  %v1043_v31 = vpop.f32.mrb[2].mxu1 }
 0x17f   :  { %v1048_v32 = vmax.f32 %v3076_v24, 0.0   ;;  %v1050_v33 = vmax.f32 %v3080_v25, 0.0   ;;  %v3078_v34 = vadd.f32 %v957_v30, %v223_v18  ;;  %v3082_v35 = vadd.f32 %v1043_v31, %v231_v19  ;;  %v959_v36 = vpop.f32.mrb[3].mxu0  ;;  %v1045_v37 = vpop.f32.mrb[3].mxu1 }
 0x180   :  { %v1049_v38 = vmax.f32 %v3077_v28, 0.0   ;;  %v1051_v39 = vmax.f32 %v3081_v29, 0.0   ;;  %v3079_v40 = vadd.f32 %v959_v36, %v227_v20  ;;  %v3083_v41 = vadd.f32 %v1045_v37, %v235_v21 }
 0x181   :  { %v1052_v42 = vmax.f32 %v3078_v34, 0.0   ;;  %v1054_v43 = vmax.f32 %v3082_v35, 0.0  }
 0x182   :  { %v1053_v44 = vmax.f32 %v3079_v40, 0.0   ;;  %v1055_v45 = vmax.f32 %v3083_v41, 0.0  }
 0x183 LB: > { %s3074_s16 = sshll.u32 %s3810_s15, 10  ;;  %v1071_v46 = vpack.c.bf16 %v3786_v44, %v3802_v38  ;;  %s3075_s18 = sshll.u32 %s3810_s15, 4  ;;  %s3810_s15 = sphi %s3908_s15, %s1061_s15   ;;  %v3806_v32 = vphi %v1048_v32, %v4198_v32   ;;  %v3802_v38 = vphi %v1049_v38, %v4197_v38   ;;  %v3798_v33 = vphi %v1050_v33, %v4196_v33   ;;  %v3794_v39 = vphi %v1051_v39, %v4195_v39   ;;  %v3790_v42 = vphi %v1052_v42, %v4194_v42   ;;  %v3786_v44 = vphi %v1053_v44, %v4193_v44   ;;  %v3782_v43 = vphi %v1054_v43, %v4192_v43   ;;  %v3778_v45 = vphi %v1055_v45, %v4191_v45  }
 0x184   : > { %s3934_s17 = scalar_lea.vmem [#allocation6], %s3074_s16  ;;  %s2116_s21 = scalar_lea.vmem %s4186_s2, %s3075_s18 }
 0x185   : > { %v3372_v47 = vld [vmem:[%s3934_s17 + $0x4] ss:$16 sps:$4 sm:$0xff]   ;;  %1877 = vmatprep.mubr.bf16.mxu0 %v1071_v46  ;;  %1963 = vmatprep.mubr.bf16.mxu1 %v1071_v46  ;;  %v3374_v48 = vld [vmem:[%s3934_s17 + $0xc] ss:$16 sps:$4 sm:$0xff]   ;;  %v3376_v49 = vld [vmem:[%s3934_s17] ss:$16 sps:$4 sm:$0xff]  }
 0x186   : > { %1845 = vmatprep.subr.bf16.mxu0 %v3372_v47  ;;  %v3377_v50 = vld [vmem:[%s3934_s17 + $0x8] ss:$16 sps:$4 sm:$0xff]   ;;  %1931 = vmatprep.subr.bf16.mxu1 %v3374_v48  ;;  %v3378_v51 = vld [vmem:[%s3934_s17 + $0x24] ss:$16 sps:$4 sm:$0xff]   ;;  %v3380_v52 = vld [vmem:[%s3934_s17 + $0x2c] ss:$16 sps:$4 sm:$0xff]  }
 0x187   : > { %1846 = vmatpush1.bf16.msra.mxu0 %v3376_v49  ;;  %1932 = vmatpush1.bf16.msra.mxu1 %v3377_v50  ;;  %v3382_v53 = vld [vmem:[%s3934_s17 + $0x20] ss:$16 sps:$4 sm:$0xff]   ;;  %v3383_v54 = vld [vmem:[%s3934_s17 + $0x28] ss:$16 sps:$4 sm:$0xff]   ;;  %v3384_v55 = vld [vmem:[%s3934_s17 + $0x44] ss:$16 sps:$4 sm:$0xff]  }
 0x188   : > { %1847 = vmatprep.subr.bf16.mxu0 %v3378_v51  ;;  %1933 = vmatprep.subr.bf16.mxu1 %v3380_v52  ;;  %v3386_v56 = vld [vmem:[%s3934_s17 + $0x4c] ss:$16 sps:$4 sm:$0xff]   ;;  %v3388_v57 = vld [vmem:[%s3934_s17 + $0x40] ss:$16 sps:$4 sm:$0xff]   ;;  %v3389_v58 = vld [vmem:[%s3934_s17 + $0x48] ss:$16 sps:$4 sm:$0xff]  }
 0x189   : > { %v3390_v59 = vld [vmem:[%s3934_s17 + $0x64] ss:$16 sps:$4 sm:$0xff]   ;;  %v3392_v60 = vld [vmem:[%s3934_s17 + $0x6c] ss:$16 sps:$4 sm:$0xff]   ;;  %v3394_v61 = vld [vmem:[%s3934_s17 + $0x60] ss:$16 sps:$4 sm:$0xff]  }
 0x18a   : > { %v3395_v62 = vld [vmem:[%s3934_s17 + $0x68] ss:$16 sps:$4 sm:$0xff]   ;;  %v3396_v63 = vld [vmem:[%s3934_s17 + $0x84] ss:$16 sps:$4 sm:$0xff]   ;;  %v3398_v0 = vld [vmem:[%s3934_s17 + $0x8c] ss:$16 sps:$4 sm:$0xff]  }
 0x18b   : > { %1848 = vmatpush1.bf16.msra.mxu0 %v3382_v53  ;;  %1934 = vmatpush1.bf16.msra.mxu1 %v3383_v54  ;;  %v3400_v2 = vld [vmem:[%s3934_s17 + $0x80] ss:$16 sps:$4 sm:$0xff]   ;;  %v3401_v3 = vld [vmem:[%s3934_s17 + $0x88] ss:$16 sps:$4 sm:$0xff]   ;;  %v3402_v4 = vld [vmem:[%s3934_s17 + $0xa4] ss:$16 sps:$4 sm:$0xff]  }
 0x18c   : > { %1849 = vmatprep.subr.bf16.mxu0 %v3384_v55  ;;  %1935 = vmatprep.subr.bf16.mxu1 %v3386_v56  ;;  %v3404_v5 = vld [vmem:[%s3934_s17 + $0xac] ss:$16 sps:$4 sm:$0xff]   ;;  %v3406_v6 = vld [vmem:[%s3934_s17 + $0xa0] ss:$16 sps:$4 sm:$0xff]   ;;  %v3407_v7 = vld [vmem:[%s3934_s17 + $0xa8] ss:$16 sps:$4 sm:$0xff]  }
 0x18d   : > { %v3408_v8 = vld [vmem:[%s3934_s17 + $0xc4] ss:$16 sps:$4 sm:$0xff]   ;;  %v3410_v9 = vld [vmem:[%s3934_s17 + $0xcc] ss:$16 sps:$4 sm:$0xff]   ;;  %v3412_v12 = vld [vmem:[%s3934_s17 + $0xc0] ss:$16 sps:$4 sm:$0xff]  }
 0x18e   : > { %v3413_v13 = vld [vmem:[%s3934_s17 + $0xc8] ss:$16 sps:$4 sm:$0xff]   ;;  %v3414_v14 = vld [vmem:[%s3934_s17 + $0xe4] ss:$16 sps:$4 sm:$0xff]   ;;  %v3416_v15 = vld [vmem:[%s3934_s17 + $0xec] ss:$16 sps:$4 sm:$0xff]  }
 0x18f   : > { %1850 = vmatpush1.bf16.msra.mxu0 %v3388_v57  ;;  %1936 = vmatpush1.bf16.msra.mxu1 %v3389_v58  ;;  %v3418_v1 = vld [vmem:[%s3934_s17 + $0xe0] ss:$16 sps:$4 sm:$0xff]   ;;  %v3419_v16 = vld [vmem:[%s3934_s17 + $0xe8] ss:$16 sps:$4 sm:$0xff]   ;;  %v3420_v17 = vld [vmem:[%s3934_s17 + $0x104] ss:$16 sps:$4 sm:$0xff]  }
 0x190   : > { %1851 = vmatprep.subr.bf16.mxu0 %v3390_v59  ;;  %1937 = vmatprep.subr.bf16.mxu1 %v3392_v60  ;;  %v3422_v18 = vld [vmem:[%s3934_s17 + $0x10c] ss:$16 sps:$4 sm:$0xff]   ;;  %v3424_v19 = vld [vmem:[%s3934_s17 + $0x100] ss:$16 sps:$4 sm:$0xff]   ;;  %v3425_v20 = vld [vmem:[%s3934_s17 + $0x108] ss:$16 sps:$4 sm:$0xff]   ;;  %v1070_v59 = vpack.c.bf16 %v3790_v42, %v3806_v32 }
 0x191   : > { %v3426_v21 = vld [vmem:[%s3934_s17 + $0x124] ss:$16 sps:$4 sm:$0xff]   ;;  %v3428_v22 = vld [vmem:[%s3934_s17 + $0x12c] ss:$16 sps:$4 sm:$0xff]   ;;  %v3430_v23 = vld [vmem:[%s3934_s17 + $0x120] ss:$16 sps:$4 sm:$0xff]  }
 0x192   : > { %v3431_v24 = vld [vmem:[%s3934_s17 + $0x128] ss:$16 sps:$4 sm:$0xff]   ;;  %v3432_v25 = vld [vmem:[%s3934_s17 + $0x144] ss:$16 sps:$4 sm:$0xff]   ;;  %v3434_v26 = vld [vmem:[%s3934_s17 + $0x14c] ss:$16 sps:$4 sm:$0xff]  }
 0x193   : > { %1852 = vmatpush1.bf16.msra.mxu0 %v3394_v61  ;;  %1938 = vmatpush1.bf16.msra.mxu1 %v3395_v62  ;;  %v3436_v27 = vld [vmem:[%s3934_s17 + $0x140] ss:$16 sps:$4 sm:$0xff]   ;;  %v3437_v28 = vld [vmem:[%s3934_s17 + $0x148] ss:$16 sps:$4 sm:$0xff]   ;;  %v3438_v29 = vld [vmem:[%s3934_s17 + $0x164] ss:$16 sps:$4 sm:$0xff]   ;;  %v1073_v62 = vpack.c.bf16 %v3778_v45, %v3794_v39 }
 0x194   : > { %1853 = vmatprep.subr.bf16.mxu0 %v3396_v63  ;;  %1939 = vmatprep.subr.bf16.mxu1 %v3398_v0  ;;  %v3440_v30 = vld [vmem:[%s3934_s17 + $0x16c] ss:$16 sps:$4 sm:$0xff]   ;;  %v3442_v31 = vld [vmem:[%s3934_s17 + $0x160] ss:$16 sps:$4 sm:$0xff]   ;;  %v3443_v34 = vld [vmem:[%s3934_s17 + $0x168] ss:$16 sps:$4 sm:$0xff]  }
 0x195   : > { %v3444_v35 = vld [vmem:[%s3934_s17 + $0x184] ss:$16 sps:$4 sm:$0xff]   ;;  %v3446_v36 = vld [vmem:[%s3934_s17 + $0x18c] ss:$16 sps:$4 sm:$0xff]   ;;  %v3448_v37 = vld [vmem:[%s3934_s17 + $0x180] ss:$16 sps:$4 sm:$0xff]  }
 0x196   : > { %v3449_v38 = vld [vmem:[%s3934_s17 + $0x188] ss:$16 sps:$4 sm:$0xff]   ;;  %v3450_v40 = vld [vmem:[%s3934_s17 + $0x1a4] ss:$16 sps:$4 sm:$0xff]   ;;  %v3452_v41 = vld [vmem:[%s3934_s17 + $0x1ac] ss:$16 sps:$4 sm:$0xff]  }
 0x197   : > { %1854 = vmatpush1.bf16.msra.mxu0 %v3400_v2  ;;  %1940 = vmatpush1.bf16.msra.mxu1 %v3401_v3  ;;  %v3454_v44 = vld [vmem:[%s3934_s17 + $0x1a0] ss:$16 sps:$4 sm:$0xff]   ;;  %v3455_v46 = vld [vmem:[%s3934_s17 + $0x1a8] ss:$16 sps:$4 sm:$0xff]   ;;  %v3456_v47 = vld [vmem:[%s3934_s17 + $0x1c4] ss:$16 sps:$4 sm:$0xff]  }
 0x198   : > { %1855 = vmatprep.subr.bf16.mxu0 %v3402_v4  ;;  %1941 = vmatprep.subr.bf16.mxu1 %v3404_v5  ;;  %v3458_v48 = vld [vmem:[%s3934_s17 + $0x1cc] ss:$16 sps:$4 sm:$0xff]   ;;  %v3460_v49 = vld [vmem:[%s3934_s17 + $0x1c0] ss:$16 sps:$4 sm:$0xff]   ;;  %v3461_v50 = vld [vmem:[%s3934_s17 + $0x1c8] ss:$16 sps:$4 sm:$0xff]  }
 0x199   : > { %v3462_v51 = vld [vmem:[%s3934_s17 + $0x1e4] ss:$16 sps:$4 sm:$0xff]   ;;  %v3464_v52 = vld [vmem:[%s3934_s17 + $0x1ec] ss:$16 sps:$4 sm:$0xff]   ;;  %v3466_v53 = vld [vmem:[%s3934_s17 + $0x1e0] ss:$16 sps:$4 sm:$0xff]  }
 0x19a   : > { %v3467_v54 = vld [vmem:[%s3934_s17 + $0x1e8] ss:$16 sps:$4 sm:$0xff]   ;;  %v3470_v55 = vld [vmem:[%s3934_s17 + $0x204] ss:$16 sps:$4 sm:$0xff]   ;;  %v3473_v56 = vld [vmem:[%s3934_s17 + $0x20c] ss:$16 sps:$4 sm:$0xff]  }
 0x19b   : > { %1856 = vmatpush1.bf16.msra.mxu0 %v3406_v6  ;;  %1942 = vmatpush1.bf16.msra.mxu1 %v3407_v7  ;;  %v3468_v57 = vld [vmem:[%s3934_s17 + $0x200] ss:$16 sps:$4 sm:$0xff]   ;;  %v3471_v58 = vld [vmem:[%s3934_s17 + $0x208] ss:$16 sps:$4 sm:$0xff]   ;;  %v3476_v60 = vld [vmem:[%s3934_s17 + $0x224] ss:$16 sps:$4 sm:$0xff]  }
 0x19c   : > { %1857 = vmatprep.subr.bf16.mxu0 %v3408_v8  ;;  %1943 = vmatprep.subr.bf16.mxu1 %v3410_v9  ;;  %v3479_v61 = vld [vmem:[%s3934_s17 + $0x22c] ss:$16 sps:$4 sm:$0xff]   ;;  %v3474_v63 = vld [vmem:[%s3934_s17 + $0x220] ss:$16 sps:$4 sm:$0xff]   ;;  %v3477_v0 = vld [vmem:[%s3934_s17 + $0x228] ss:$16 sps:$4 sm:$0xff]  }
 0x19d   : > { %v3482_v32 = vld [vmem:[%s3934_s17 + $0x244] ss:$16 sps:$4 sm:$0xff]   ;;  %v3485_v42 = vld [vmem:[%s3934_s17 + $0x24c] ss:$16 sps:$4 sm:$0xff]   ;;  %v3480_v2 = vld [vmem:[%s3934_s17 + $0x240] ss:$16 sps:$4 sm:$0xff]  }
 0x19e   : > { %v3483_v39 = vld [vmem:[%s3934_s17 + $0x248] ss:$16 sps:$4 sm:$0xff]   ;;  %v3488_v45 = vld [vmem:[%s3934_s17 + $0x264] ss:$16 sps:$4 sm:$0xff]   ;;  %v3491_v3 = vld [vmem:[%s3934_s17 + $0x26c] ss:$16 sps:$4 sm:$0xff]  }
 0x19f   : > { %1858 = vmatpush1.bf16.msra.mxu0 %v3412_v12  ;;  %1944 = vmatpush1.bf16.msra.mxu1 %v3413_v13  ;;  %v3486_v4 = vld [vmem:[%s3934_s17 + $0x260] ss:$16 sps:$4 sm:$0xff]   ;;  %v3489_v5 = vld [vmem:[%s3934_s17 + $0x268] ss:$16 sps:$4 sm:$0xff]   ;;  %v3494_v6 = vld [vmem:[%s3934_s17 + $0x284] ss:$16 sps:$4 sm:$0xff]  }
 0x1a0   : > { %1859 = vmatprep.subr.bf16.mxu0 %v3414_v14  ;;  %1945 = vmatprep.subr.bf16.mxu1 %v3416_v15  ;;  %v3497_v7 = vld [vmem:[%s3934_s17 + $0x28c] ss:$16 sps:$4 sm:$0xff]   ;;  %v3492_v8 = vld [vmem:[%s3934_s17 + $0x280] ss:$16 sps:$4 sm:$0xff]   ;;  %v3495_v9 = vld [vmem:[%s3934_s17 + $0x288] ss:$16 sps:$4 sm:$0xff]  }
 0x1a1   : > { %v3500_v12 = vld [vmem:[%s3934_s17 + $0x2a4] ss:$16 sps:$4 sm:$0xff]   ;;  %v3503_v13 = vld [vmem:[%s3934_s17 + $0x2ac] ss:$16 sps:$4 sm:$0xff]   ;;  %v3498_v14 = vld [vmem:[%s3934_s17 + $0x2a0] ss:$16 sps:$4 sm:$0xff]  }
 0x1a2   : > { %v3501_v15 = vld [vmem:[%s3934_s17 + $0x2a8] ss:$16 sps:$4 sm:$0xff]   ;;  %s1061_s15 = sadd.s32 1, %s3810_s15  }
 0x1a3   : > { %1860 = vmatpush1.bf16.msra.mxu0 %v3418_v1  ;;  %1946 = vmatpush1.bf16.msra.mxu1 %v3419_v16  ;;  %v3506_v1 = vld [vmem:[%s3934_s17 + $0x2c4] ss:$16 sps:$4 sm:$0xff]   ;;  %v3509_v16 = vld [vmem:[%s3934_s17 + $0x2cc] ss:$16 sps:$4 sm:$0xff]   ;;  %p1058_p2 = scmp.ge.s32.totalorder %s1061_s15, 3  }
 0x1a4   : > { %1861 = vmatprep.subr.bf16.mxu0 %v3420_v17  ;;  %1947 = vmatprep.subr.bf16.mxu1 %v3422_v18  ;;  %v3504_v17 = vld [vmem:[%s3934_s17 + $0x2c0] ss:$16 sps:$4 sm:$0xff]   ;;  %v3507_v18 = vld [vmem:[%s3934_s17 + $0x2c8] ss:$16 sps:$4 sm:$0xff]   ;;  %s3820_s26 = smov (%p1058_p2), [#allocation8]  }
 0x1a5   :  { %s2703_s27 = sshll.u32 (%p1058_p2), %s3820_s26, 4  ;;  %s2704_s27 = int_to_ptr.vmem [resolvable:$true] %s2703_s27 }
 0x1a6   :  { %p3717_p4 = scmp.lt.s32.totalorder (%p1058_p2), %s2704_s27, %s2704_s27 }
 0x1a7   : > { %1862 = vmatpush1.bf16.msra.mxu0 %v3424_v19  ;;  %1948 = vmatpush1.bf16.msra.mxu1 %v3425_v20  ;;  %v3512_v19 = vld [vmem:[%s3934_s17 + $0x2e4] ss:$16 sps:$4 sm:$0xff]   ;;  %v3515_v20 = vld [vmem:[%s3934_s17 + $0x2ec] ss:$16 sps:$4 sm:$0xff]  }
 0x1a8   : > { %1863 = vmatprep.subr.bf16.mxu0 %v3426_v21  ;;  %1949 = vmatprep.subr.bf16.mxu1 %v3428_v22  ;;  %v3510_v21 = vld [vmem:[%s3934_s17 + $0x2e0] ss:$16 sps:$4 sm:$0xff]   ;;  %v3513_v22 = vld [vmem:[%s3934_s17 + $0x2e8] ss:$16 sps:$4 sm:$0xff]  }
 0x1ab   : > { %1864 = vmatpush1.bf16.msra.mxu0 %v3430_v23  ;;  %1950 = vmatpush1.bf16.msra.mxu1 %v3431_v24  ;;  %v3518_v23 = vld [vmem:[%s3934_s17 + $0x304] ss:$16 sps:$4 sm:$0xff]   ;;  %v3521_v24 = vld [vmem:[%s3934_s17 + $0x30c] ss:$16 sps:$4 sm:$0xff]  }
 0x1ac   : > { %1865 = vmatprep.subr.bf16.mxu0 %v3432_v25  ;;  %1951 = vmatprep.subr.bf16.mxu1 %v3434_v26  ;;  %v3516_v25 = vld [vmem:[%s3934_s17 + $0x300] ss:$16 sps:$4 sm:$0xff]   ;;  %v3519_v26 = vld [vmem:[%s3934_s17 + $0x308] ss:$16 sps:$4 sm:$0xff]  }
 0x1af   : > { %1866 = vmatpush1.bf16.msra.mxu0 %v3436_v27  ;;  %1952 = vmatpush1.bf16.msra.mxu1 %v3437_v28  ;;  %v3524_v27 = vld [vmem:[%s3934_s17 + $0x324] ss:$16 sps:$4 sm:$0xff]   ;;  %v3527_v28 = vld [vmem:[%s3934_s17 + $0x32c] ss:$16 sps:$4 sm:$0xff]  }
 0x1b0   : > { %1867 = vmatprep.subr.bf16.mxu0 %v3438_v29  ;;  %1953 = vmatprep.subr.bf16.mxu1 %v3440_v30  ;;  %v3522_v29 = vld [vmem:[%s3934_s17 + $0x320] ss:$16 sps:$4 sm:$0xff]   ;;  %v3525_v30 = vld [vmem:[%s3934_s17 + $0x328] ss:$16 sps:$4 sm:$0xff]  }
 0x1b3   : > { %1868 = vmatpush1.bf16.msra.mxu0 %v3442_v31  ;;  %1954 = vmatpush1.bf16.msra.mxu1 %v3443_v34  ;;  %v3530_v31 = vld [vmem:[%s3934_s17 + $0x344] ss:$16 sps:$4 sm:$0xff]   ;;  %v3533_v34 = vld [vmem:[%s3934_s17 + $0x34c] ss:$16 sps:$4 sm:$0xff]  }
 0x1b4   : > { %1869 = vmatprep.subr.bf16.mxu0 %v3444_v35  ;;  %1955 = vmatprep.subr.bf16.mxu1 %v3446_v36  ;;  %v3528_v35 = vld [vmem:[%s3934_s17 + $0x340] ss:$16 sps:$4 sm:$0xff]   ;;  %v3531_v36 = vld [vmem:[%s3934_s17 + $0x348] ss:$16 sps:$4 sm:$0xff]  }
 0x1b7   : > { %1870 = vmatpush1.bf16.msra.mxu0 %v3448_v37  ;;  %1956 = vmatpush1.bf16.msra.mxu1 %v3449_v38  ;;  %v3536_v37 = vld [vmem:[%s3934_s17 + $0x364] ss:$16 sps:$4 sm:$0xff]   ;;  %v3539_v38 = vld [vmem:[%s3934_s17 + $0x36c] ss:$16 sps:$4 sm:$0xff]  }
 0x1b8   : > { %1871 = vmatprep.subr.bf16.mxu0 %v3450_v40  ;;  %1957 = vmatprep.subr.bf16.mxu1 %v3452_v41  ;;  %v3534_v40 = vld [vmem:[%s3934_s17 + $0x360] ss:$16 sps:$4 sm:$0xff]   ;;  %v3537_v41 = vld [vmem:[%s3934_s17 + $0x368] ss:$16 sps:$4 sm:$0xff]  }
 0x1bb   : > { %1872 = vmatpush1.bf16.msra.mxu0 %v3454_v44  ;;  %1958 = vmatpush1.bf16.msra.mxu1 %v3455_v46  ;;  %v3542_v44 = vld [vmem:[%s3934_s17 + $0x384] ss:$16 sps:$4 sm:$0xff]   ;;  %v3545_v46 = vld [vmem:[%s3934_s17 + $0x38c] ss:$16 sps:$4 sm:$0xff]  }
 0x1bc   : > { %1873 = vmatprep.subr.bf16.mxu0 %v3456_v47  ;;  %1959 = vmatprep.subr.bf16.mxu1 %v3458_v48  ;;  %v3540_v47 = vld [vmem:[%s3934_s17 + $0x380] ss:$16 sps:$4 sm:$0xff]   ;;  %v3543_v48 = vld [vmem:[%s3934_s17 + $0x388] ss:$16 sps:$4 sm:$0xff]  }
 0x1bf   : > { %1874 = vmatpush1.bf16.msra.mxu0 %v3460_v49  ;;  %1960 = vmatpush1.bf16.msra.mxu1 %v3461_v50  ;;  %v3548_v49 = vld [vmem:[%s3934_s17 + $0x3a4] ss:$16 sps:$4 sm:$0xff]   ;;  %v3551_v50 = vld [vmem:[%s3934_s17 + $0x3ac] ss:$16 sps:$4 sm:$0xff]  }
 0x1c0   : > { %1875 = vmatprep.subr.bf16.mxu0 %v3462_v51  ;;  %1961 = vmatprep.subr.bf16.mxu1 %v3464_v52  ;;  %v3546_v51 = vld [vmem:[%s3934_s17 + $0x3a0] ss:$16 sps:$4 sm:$0xff]   ;;  %v3549_v52 = vld [vmem:[%s3934_s17 + $0x3a8] ss:$16 sps:$4 sm:$0xff]  }
 0x1c3   : > { %1876 = vmatpush1.bf16.msra.mxu0 %v3466_v53  ;;  %1962 = vmatpush1.bf16.msra.mxu1 %v3467_v54  ;;  %v3554_v53 = vld [vmem:[%s3934_s17 + $0x3c4] ss:$16 sps:$4 sm:$0xff]   ;;  %v3557_v54 = vld [vmem:[%s3934_s17 + $0x3cc] ss:$16 sps:$4 sm:$0xff]  }
 0x1c4   : > { %1888 = vmatprep.subr.bf16.mxu0 %v3470_v55  ;;  %1974 = vmatprep.subr.bf16.mxu1 %v3473_v56  ;;  %v3552_v55 = vld [vmem:[%s3934_s17 + $0x3c0] ss:$16 sps:$4 sm:$0xff]   ;;  %v3555_v56 = vld [vmem:[%s3934_s17 + $0x3c8] ss:$16 sps:$4 sm:$0xff]  }
 0x1c6   : > { %1878 = vmatmul.mubr.bf16.vlgmr.msra.gmra.mrb[0].mxu0 %v1070_v59  ;;  %1964 = vmatmul.mubr.bf16.vlgmr.msra.gmra.mrb[0].mxu1 %v1070_v59  ;;  %v3558_v59 = vld [vmem:[%s3934_s17 + $0x3e0] ss:$16 sps:$4 sm:$0xff]  }
 0x1c7   : > { %1889 = vmatpush1.bf16.msra.mxu0 %v3468_v57  ;;  %1975 = vmatpush1.bf16.msra.mxu1 %v3471_v58  ;;  %v3560_v57 = vld [vmem:[%s3934_s17 + $0x3e4] ss:$16 sps:$4 sm:$0xff]   ;;  %v3563_v58 = vld [vmem:[%s3934_s17 + $0x3ec] ss:$16 sps:$4 sm:$0xff]  }
 0x1c8   : > { %1890 = vmatprep.subr.bf16.mxu0 %v3476_v60  ;;  %1976 = vmatprep.subr.bf16.mxu1 %v3479_v61  ;;  %v3561_v60 = vld [vmem:[%s3934_s17 + $0x3e8] ss:$16 sps:$4 sm:$0xff]   ;;  %v1072_v61 = vpack.c.bf16 %v3782_v43, %v3798_v33 }
 0x1c9   : > { %1920 = vmatprep.mubr.bf16.mxu0 %v1073_v62  ;;  %2006 = vmatprep.mubr.bf16.mxu1 %v1073_v62 }
 0x1cb   : > { %1891 = vmatpush1.bf16.msra.mxu0 %v3474_v63  ;;  %1977 = vmatpush1.bf16.msra.mxu1 %v3477_v0 }
 0x1cc   : > { %1892 = vmatprep.subr.bf16.mxu0 %v3482_v32  ;;  %1978 = vmatprep.subr.bf16.mxu1 %v3485_v42 }
 0x1cf   : > { %1893 = vmatpush1.bf16.msra.mxu0 %v3480_v2  ;;  %1979 = vmatpush1.bf16.msra.mxu1 %v3483_v39 }
 0x1d0   : > { %1894 = vmatprep.subr.bf16.mxu0 %v3488_v45  ;;  %1980 = vmatprep.subr.bf16.mxu1 %v3491_v3 }
 0x1d3   : > { %1895 = vmatpush1.bf16.msra.mxu0 %v3486_v4  ;;  %1981 = vmatpush1.bf16.msra.mxu1 %v3489_v5 }
 0x1d4   : > { %1896 = vmatprep.subr.bf16.mxu0 %v3494_v6  ;;  %1982 = vmatprep.subr.bf16.mxu1 %v3497_v7 }
 0x1d7   : > { %1897 = vmatpush1.bf16.msra.mxu0 %v3492_v8  ;;  %1983 = vmatpush1.bf16.msra.mxu1 %v3495_v9 }
 0x1d8   : > { %1898 = vmatprep.subr.bf16.mxu0 %v3500_v12  ;;  %1984 = vmatprep.subr.bf16.mxu1 %v3503_v13 }
 0x1db   : > { %1899 = vmatpush1.bf16.msra.mxu0 %v3498_v14  ;;  %1985 = vmatpush1.bf16.msra.mxu1 %v3501_v15 }
 0x1dc   : > { %1900 = vmatprep.subr.bf16.mxu0 %v3506_v1  ;;  %1986 = vmatprep.subr.bf16.mxu1 %v3509_v16 }
 0x1df   : > { %1901 = vmatpush1.bf16.msra.mxu0 %v3504_v17  ;;  %1987 = vmatpush1.bf16.msra.mxu1 %v3507_v18 }
 0x1e0   : > { %1902 = vmatprep.subr.bf16.mxu0 %v3512_v19  ;;  %1988 = vmatprep.subr.bf16.mxu1 %v3515_v20 }
 0x1e3   : > { %1903 = vmatpush1.bf16.msra.mxu0 %v3510_v21  ;;  %1989 = vmatpush1.bf16.msra.mxu1 %v3513_v22 }
 0x1e4   : > { %1904 = vmatprep.subr.bf16.mxu0 %v3518_v23  ;;  %1990 = vmatprep.subr.bf16.mxu1 %v3521_v24 }
 0x1e7   : > { %1905 = vmatpush1.bf16.msra.mxu0 %v3516_v25  ;;  %1991 = vmatpush1.bf16.msra.mxu1 %v3519_v26 }
 0x1e8   : > { %1906 = vmatprep.subr.bf16.mxu0 %v3524_v27  ;;  %1992 = vmatprep.subr.bf16.mxu1 %v3527_v28 }
 0x1eb   : > { %1907 = vmatpush1.bf16.msra.mxu0 %v3522_v29  ;;  %1993 = vmatpush1.bf16.msra.mxu1 %v3525_v30 }
 0x1ec   : > { %1908 = vmatprep.subr.bf16.mxu0 %v3530_v31  ;;  %1994 = vmatprep.subr.bf16.mxu1 %v3533_v34 }
 0x1ef   : > { %1909 = vmatpush1.bf16.msra.mxu0 %v3528_v35  ;;  %1995 = vmatpush1.bf16.msra.mxu1 %v3531_v36 }
 0x1f0   : > { %1910 = vmatprep.subr.bf16.mxu0 %v3536_v37  ;;  %1996 = vmatprep.subr.bf16.mxu1 %v3539_v38 }
 0x1f3   : > { %1911 = vmatpush1.bf16.msra.mxu0 %v3534_v40  ;;  %1997 = vmatpush1.bf16.msra.mxu1 %v3537_v41 }
 0x1f4   : > { %1912 = vmatprep.subr.bf16.mxu0 %v3542_v44  ;;  %1998 = vmatprep.subr.bf16.mxu1 %v3545_v46 }
 0x1f7   : > { %1913 = vmatpush1.bf16.msra.mxu0 %v3540_v47  ;;  %1999 = vmatpush1.bf16.msra.mxu1 %v3543_v48 }
 0x1f8   : > { %1914 = vmatprep.subr.bf16.mxu0 %v3548_v49  ;;  %2000 = vmatprep.subr.bf16.mxu1 %v3551_v50 }
 0x1fb   : > { %1915 = vmatpush1.bf16.msra.mxu0 %v3546_v51  ;;  %2001 = vmatpush1.bf16.msra.mxu1 %v3549_v52 }
 0x1fc   : > { %1916 = vmatprep.subr.bf16.mxu0 %v3554_v53  ;;  %2002 = vmatprep.subr.bf16.mxu1 %v3557_v54 }
 0x1ff   : > { %1917 = vmatpush1.bf16.msra.mxu0 %v3552_v55  ;;  %2003 = vmatpush1.bf16.msra.mxu1 %v3555_v56 }
 0x200   : > { %1918 = vmatprep.subr.bf16.mxu0 %v3560_v57  ;;  %2004 = vmatprep.subr.bf16.mxu1 %v3563_v58 }
 0x203   : > { %1919 = vmatpush1.bf16.msra.mxu0 %v3558_v59  ;;  %2005 = vmatpush1.bf16.msra.mxu1 %v3561_v60 }
 0x206   : > { %1921 = vmatmul.mubr.bf16.vlgmr.msra.gmra.mrb[0].mxu0 %v1072_v61  ;;  %2007 = vmatmul.mubr.bf16.vlgmr.msra.gmra.mrb[0].mxu1 %v1072_v61 }
 0x2d9   : > { %v1922_v62 = vpop.f32.mrb[0].mxu0  ;;  %v2008_v63 = vpop.f32.mrb[0].mxu1 }
 0x2da   : > { %v1924_v0 = vpop.f32.mrb[1].mxu0  ;;  %v2010_v32 = vpop.f32.mrb[1].mxu1 }
 0x2db   : > { %v1926_v42 = vpop.f32.mrb[2].mxu0  ;;  %v2012_v2 = vpop.f32.mrb[2].mxu1 }
 0x2dc   : > { %v2017_v39 = vadd.f32 %v1926_v42, %v1922_v62  ;;  %v2031_v45 = vadd.f32 %v2012_v2, %v2008_v63  ;;  %v1928_v3 = vpop.f32.mrb[3].mxu0  ;;  %v2014_v4 = vpop.f32.mrb[3].mxu1 }
 0x2dd   : > { %v2024_v5 = vadd.f32 %v1928_v3, %v1924_v0  ;;  %v2038_v6 = vadd.f32 %v2014_v4, %v2010_v32 }
 0x2de   : > { %v2018_v7 = vrot.slane %v2017_v39, 4  ;;  %v2032_v8 = vrot.slane %v2031_v45, 4 }
 0x2df   : > { %v2025_v9 = vrot.slane %v2024_v5, 4  ;;  %v2039_v33 = vrot.slane %v2038_v6, 4 }
 0x2e0   : > { %v2019_v43 = vadd.f32 %v2018_v7, %v2017_v39  ;;  %v2033_v12 = vadd.f32 %v2032_v8, %v2031_v45 }
 0x2e1   : > { %v2026_v13 = vadd.f32 %v2025_v9, %v2024_v5  ;;  %v2040_v14 = vadd.f32 %v2039_v33, %v2038_v6 }
 0x2e2   : > { %v2020_v15 = vrot.slane %v2019_v43, 2  ;;  %v2034_v1 = vrot.slane %v2033_v12, 2 }
 0x2e3   : > { %v2027_v16 = vrot.slane %v2026_v13, 2  ;;  %v2041_v17 = vrot.slane %v2040_v14, 2 }
 0x2e4   : > { %v2021_v18 = vadd.f32 %v2020_v15, %v2019_v43  ;;  %v2035_v19 = vadd.f32 %v2034_v1, %v2033_v12 }
 0x2e5   : > { %v2028_v20 = vadd.f32 %v2027_v16, %v2026_v13  ;;  %v2042_v21 = vadd.f32 %v2041_v17, %v2040_v14 }
 0x2e6   : > { %v2022_v22 = vrot.slane %v2021_v18, 1  ;;  %v2036_v23 = vrot.slane %v2035_v19, 1 }
 0x2e7   : > { %v2029_v24 = vrot.slane %v2028_v20, 1  ;;  %v2043_v25 = vrot.slane %v2042_v21, 1 }
 0x2e8   : > { %v2023_v26 = vadd.f32 %v2022_v22, %v2021_v18  ;;  %v2037_v27 = vadd.f32 %v2036_v23, %v2035_v19 }
 0x2e9   : > { %v2030_v28 = vadd.f32 %v2029_v24, %v2028_v20  ;;  %v2044_v29 = vadd.f32 %v2043_v25, %v2042_v21  ;;  %v2123_v24 = vsub.s32 1, %v3874_v10  ;;  %v2117_v25 = vld [vmem:[%s2116_s21] sm:$0x77] }
 0x2ea   : > { %v2046_v30 = vmul.f32 0.0625, %v2023_v26  ;;  %v2048_v31 = vmul.f32 0.0625, %v2037_v27  ;;  %v2167_v26 = vsub.s32 2, %v3874_v10  ;;  %v2127_v27 = vsub.s32 5, %v3874_v10 }
 0x2eb   : > { %v2047_v34 = vmul.f32 0.0625, %v2030_v28  ;;  %v2049_v35 = vmul.f32 0.0625, %v2044_v29  ;;  %v2118_v28 = vld [vmem:[%s2116_s21 + $0x8] sm:$0x77]  ;;  %v2171_v29 = vsub.s32 6, %v3874_v10 }
 0x2ec   : > { %v4070_v36 = vsub.f32 %v1922_v62, %v2046_v30  ;;  %v4072_v37 = vsub.f32 %v1926_v42, %v2046_v30  ;;  %v4074_v38 = vsub.f32 %v2008_v63, %v2048_v31  ;;  %v4076_v40 = vsub.f32 %v2012_v2, %v2048_v31  ;;  %v3588_v10 = vld [vmem:[#allocation6 + $0xc40] ss:$16 sps:$4 sm:$0xff] (%p1058_p2)  }
 0x2ed   : > { %v4078_v41 = vsub.f32 %v1924_v0, %v2047_v34  ;;  %v4080_v44 = vsub.f32 %v1928_v3, %v2047_v34  ;;  %v4082_v46 = vsub.f32 %v2010_v32, %v2049_v35  ;;  %v4084_v47 = vsub.f32 %v2014_v4, %v2049_v35 }
 0x2ee   : > { %v2058_v48 = vmul.f32 %v4070_v36, %v4070_v36  ;;  %v2062_v49 = vmul.f32 %v4072_v37, %v4072_v37  ;;  %v2060_v50 = vmul.f32 %v4074_v38, %v4074_v38  ;;  %v2064_v51 = vmul.f32 %v4076_v40, %v4076_v40 }
 0x2ef   : > { %v2059_v52 = vmul.f32 %v4078_v41, %v4078_v41  ;;  %v2063_v53 = vmul.f32 %v4080_v44, %v4080_v44  ;;  %v2061_v54 = vmul.f32 %v4082_v46, %v4082_v46  ;;  %v2065_v55 = vmul.f32 %v4084_v47, %v4084_v47 }
 0x2f0   : > { %v2066_v56 = vadd.f32 %v2062_v49, %v2058_v48  ;;  %v2080_v57 = vadd.f32 %v2064_v51, %v2060_v50  ;;  %v2124_v30 = vrot.slane %v2117_v25, %v2123_v24  ;;  %v2168_v31 = vrot.slane %v2117_v25, %v2167_v26 }
 0x2f1   : > { %v2073_v58 = vadd.f32 %v2063_v53, %v2059_v52  ;;  %v2087_v59 = vadd.f32 %v2065_v55, %v2061_v54  ;;  %v2132_v34 = vrot.slane %v2118_v28, %v2123_v24  ;;  %v2128_v35 = vrot.slane %v2117_v25, %v2127_v27 }
 0x2f2   : > { %v2067_v60 = vrot.slane %v2066_v56, 4  ;;  %v2081_v61 = vrot.slane %v2080_v57, 4  ;;  %v2176_v48 = vrot.slane %v2118_v28, %v2167_v26  ;;  %v2136_v49 = vrot.slane %v2118_v28, %v2127_v27  ;;  %v3576_v27 = vld [vmem:[#allocation6 + $0xc00] ss:$16 sps:$4 sm:$0xff] (%p1058_p2)  }
 0x2f3   : > { %v2074_v62 = vrot.slane %v2073_v58, 4  ;;  %v2088_v63 = vrot.slane %v2087_v59, 4  ;;  %v2172_v50 = vrot.slane %v2117_v25, %v2171_v29  ;;  %v2180_v51 = vrot.slane %v2118_v28, %v2171_v29  ;;  %v3577_v28 = vld [vmem:[#allocation6 + $0xe00] ss:$16 sps:$4 sm:$0xff] (%p1058_p2)   ;;  %v3578_v29 = vld [vmem:[#allocation6 + $0xc24] ss:$16 sps:$4 sm:$0xff] (%p1058_p2)  }
 0x2f4   : > { %v2068_v0 = vadd.f32 %v2067_v60, %v2066_v56  ;;  %v2082_v32 = vadd.f32 %v2081_v61, %v2080_v57  ;;  %v2144_v52 = vrot.slane %v2124_v30, %v2123_v24  ;;  %v2188_v54 = vrot.slane %v2168_v31, %v2167_v26  ;;  %v3580_v30 = vld [vmem:[#allocation6 + $0xe24] ss:$16 sps:$4 sm:$0xff] (%p1058_p2)   ;;  %v3582_v31 = vld [vmem:[#allocation6 + $0xc20] ss:$16 sps:$4 sm:$0xff] (%p1058_p2)  }
 0x2f5   : > { %v2075_v42 = vadd.f32 %v2074_v62, %v2073_v58  ;;  %v2089_v2 = vadd.f32 %v2088_v63, %v2087_v59  ;;  %v2152_v55 = vrot.slane %v2132_v34, %v2123_v24  ;;  %v2148_v56 = vrot.slane %v2128_v35, %v2123_v24  ;;  %v3583_v34 = vld [vmem:[#allocation6 + $0xe20] ss:$16 sps:$4 sm:$0xff] (%p1058_p2)   ;;  %v3584_v35 = vld [vmem:[#allocation6 + $0xc44] ss:$16 sps:$4 sm:$0xff] (%p1058_p2)  }
 0x2f6   : > { %v2069_v39 = vrot.slane %v2068_v0, 2  ;;  %v2083_v45 = vrot.slane %v2082_v32, 2  ;;  %v2196_v60 = vrot.slane %v2176_v48, %v2167_v26  ;;  %v2156_v61 = vrot.slane %v2136_v49, %v2123_v24  ;;  %v3586_v48 = vld [vmem:[#allocation6 + $0xe44] ss:$16 sps:$4 sm:$0xff] (%p1058_p2)  }
 0x2f7   : > { %v2076_v3 = vrot.slane %v2075_v42, 2  ;;  %v2090_v4 = vrot.slane %v2089_v2, 2  ;;  %v3592_v49 = vld [vmem:[#allocation6 + $0xe64] ss:$16 sps:$4 sm:$0xff] (%p1058_p2)  }
 0x2f8   : > { %v2070_v5 = vadd.f32 %v2069_v39, %v2068_v0  ;;  %v2084_v6 = vadd.f32 %v2083_v45, %v2082_v32  ;;  %v2192_v32 = vrot.slane %v2172_v50, %v2167_v26  ;;  %v3594_v50 = vld [vmem:[#allocation6 + $0xc60] ss:$16 sps:$4 sm:$0xff] (%p1058_p2)  }
 0x2f9   : > { %v2077_v7 = vadd.f32 %v2076_v3, %v2075_v42  ;;  %v2091_v8 = vadd.f32 %v2090_v4, %v2089_v2  ;;  %v2200_v42 = vrot.slane %v2180_v51, %v2167_v26  ;;  %v3574_v26 = vld [vmem:[#allocation6 + $0xe04] ss:$16 sps:$4 sm:$0xff] (%p1058_p2)   ;;  %v3595_v51 = vld [vmem:[#allocation6 + $0xe60] ss:$16 sps:$4 sm:$0xff] (%p1058_p2)  }
 0x2fa   : > { %v2071_v9 = vrot.slane %v2070_v5, 1  ;;  %v2085_v33 = vrot.slane %v2084_v6, 1  ;;  %2649 = vmatprep.subr.bf16.mxu1 (%p1058_p2), %v3574_v26  ;;  %v3656_v26 = vld [vmem:[#allocation6 + $0xdc4] ss:$16 sps:$4 sm:$0xff] (%p1058_p2)  }
 0x2fb   : > { %v2078_v43 = vrot.slane %v2077_v7, 1  ;;  %v2092_v12 = vrot.slane %v2091_v8, 1  ;;  %2650 = vmatpush1.bf16.msra.mxu1 (%p1058_p2), %v3577_v28  ;;  %v3660_v28 = vld [vmem:[#allocation6 + $0xdc0] ss:$16 sps:$4 sm:$0xff] (%p1058_p2)  }
 0x2fc   : > { %v2072_v13 = vadd.f32 %v2071_v9, %v2070_v5  ;;  %v2086_v14 = vadd.f32 %v2085_v33, %v2084_v6  ;;  %2651 = vmatprep.subr.bf16.mxu1 (%p1058_p2), %v3580_v30  ;;  %v3662_v30 = vld [vmem:[#allocation6 + $0xde4] ss:$16 sps:$4 sm:$0xff] (%p1058_p2)  }
 0x2fd   : > { %v2079_v15 = vadd.f32 %v2078_v43, %v2077_v7  ;;  %v2093_v1 = vadd.f32 %v2092_v12, %v2091_v8 }
 0x2fe   : > { %v2094_v16 = vmul.f32 0.0625, %v2072_v13  ;;  %v2096_v17 = vmul.f32 0.0625, %v2086_v14 }
 0x2ff   : > { %v2095_v18 = vmul.f32 0.0625, %v2079_v15  ;;  %v2097_v19 = vmul.f32 0.0625, %v2093_v1  ;;  %2652 = vmatpush1.bf16.msra.mxu1 (%p1058_p2), %v3583_v34  ;;  %v3666_v34 = vld [vmem:[#allocation6 + $0xde0] ss:$16 sps:$4 sm:$0xff] (%p1058_p2)  }
 0x300   : > { %v2098_v20 = vadd.f32 1e-05, %v2094_v16  ;;  %v2100_v21 = vadd.f32 1e-05, %v2096_v17  ;;  %2653 = vmatprep.subr.bf16.mxu1 (%p1058_p2), %v3586_v48 }
 0x301   : > { %v2099_v22 = vadd.f32 1e-05, %v2095_v18  ;;  %v2101_v23 = vadd.f32 1e-05, %v2097_v19 }
 0x302   : > { %3564 = vrsqrt.f32 %v2098_v20 }
 0x303   : > { %3566 = vrsqrt.f32 %v2100_v21 }
 0x304   : > { %3568 = vrsqrt.f32 %v2099_v22 }
 0x305   : > { %3570 = vrsqrt.f32 %v2101_v23  ;;  %v3572_v23 = vld [vmem:[#allocation6 + $0xc04] ss:$16 sps:$4 sm:$0xff] (%p1058_p2)  }
 0x306   :  { %2608 = vmatprep.subr.bf16.mxu0 (%p1058_p2), %v3572_v23  ;;  %v3652_v23 = vld [vmem:[#allocation6 + $0xfa4] ss:$16 sps:$4 sm:$0xff] (%p1058_p2)  }
 0x307   :  { %2609 = vmatpush1.bf16.msra.mxu0 (%p1058_p2), %v3576_v27  ;;  %v3658_v27 = vld [vmem:[#allocation6 + $0xfc4] ss:$16 sps:$4 sm:$0xff] (%p1058_p2)  }
 0x308   :  { %2610 = vmatprep.subr.bf16.mxu0 (%p1058_p2), %v3578_v29  ;;  %v3661_v29 = vld [vmem:[#allocation6 + $0xfc0] ss:$16 sps:$4 sm:$0xff] (%p1058_p2)  }
 0x30b   :  { %2611 = vmatpush1.bf16.msra.mxu0 (%p1058_p2), %v3582_v31  ;;  %v3664_v31 = vld [vmem:[#allocation6 + $0xfe4] ss:$16 sps:$4 sm:$0xff] (%p1058_p2)  }
 0x30c   : > { %v3565_v53 = vpop.eup %3564  ;;  %2612 = vmatprep.subr.bf16.mxu0 (%p1058_p2), %v3584_v35  ;;  %v3667_v35 = vld [vmem:[#allocation6 + $0xfe0] ss:$16 sps:$4 sm:$0xff] (%p1058_p2)  }
 0x30d   : > { %v3567_v57 = vpop.eup %3566  ;;  %v2106_v58 = vmul.f32 %v3565_v53, %v4070_v36  ;;  %v2110_v59 = vmul.f32 %v3565_v53, %v4072_v37  ;;  %v3598_v53 = vld [vmem:[#allocation6 + $0xe84] ss:$16 sps:$4 sm:$0xff] (%p1058_p2)  }
 0x30e   : > { %v3569_v62 = vpop.eup %3568  ;;  %v2108_v63 = vmul.f32 %v3567_v57, %v4074_v38  ;;  %v2112_v0 = vmul.f32 %v3567_v57, %v4076_v40  ;;  %v3604_v57 = vld [vmem:[#allocation6 + $0xea4] ss:$16 sps:$4 sm:$0xff] (%p1058_p2)  }
 0x30f   : > { %v3571_v2 = vpop.eup %3570  ;;  %v2157_v39 = vmul.f32 %v2144_v52, %v2106_v58  ;;  %v2161_v45 = vmul.f32 %v2144_v52, %v2110_v59  ;;  %v2107_v3 = vmul.f32 %v3569_v62, %v4078_v41  ;;  %v2111_v4 = vmul.f32 %v3569_v62, %v4080_v44  ;;  %2613 = vmatpush1.bf16.msra.mxu0 (%p1058_p2), %v3588_v10  ;;  %v3596_v52 = vld [vmem:[#allocation6 + $0xc84] ss:$16 sps:$4 sm:$0xff] (%p1058_p2)   ;;  %v3606_v58 = vld [vmem:[#allocation6 + $0xca0] ss:$16 sps:$4 sm:$0xff] (%p1058_p2)  }
 0x310   : > { %v2159_v5 = vmul.f32 %v2152_v55, %v2108_v63  ;;  %v2163_v36 = vmul.f32 %v2152_v55, %v2112_v0  ;;  %v2109_v37 = vmul.f32 %v3571_v2, %v4082_v46  ;;  %v2113_v6 = vmul.f32 %v3571_v2, %v4084_v47  ;;  %v3601_v55 = vld [vmem:[#allocation6 + $0xe80] ss:$16 sps:$4 sm:$0xff] (%p1058_p2)   ;;  %v3614_v0 = vld [vmem:[#allocation6 + $0xce4] ss:$16 sps:$4 sm:$0xff] (%p1058_p2)  }
 0x311   : > { %v4118_v7 = vadd.f32 %v2188_v54, %v2157_v39  ;;  %v4120_v38 = vadd.f32 %v2188_v54, %v2161_v45  ;;  %v2158_v40 = vmul.f32 %v2148_v56, %v2107_v3  ;;  %v2162_v9 = vmul.f32 %v2148_v56, %v2111_v4  ;;  %v3600_v54 = vld [vmem:[#allocation6 + $0xc80] ss:$16 sps:$4 sm:$0xff] (%p1058_p2)   ;;  %v3602_v56 = vld [vmem:[#allocation6 + $0xca4] ss:$16 sps:$4 sm:$0xff] (%p1058_p2)  }
 0x312   : > { %v4122_v33 = vadd.f32 %v2196_v60, %v2159_v5  ;;  %v4124_v43 = vadd.f32 %v2196_v60, %v2163_v36  ;;  %v2160_v14 = vmul.f32 %v2156_v61, %v2109_v37  ;;  %v2164_v41 = vmul.f32 %v2156_v61, %v2113_v6  ;;  %v3607_v59 = vld [vmem:[#allocation6 + $0xea0] ss:$16 sps:$4 sm:$0xff] (%p1058_p2)   ;;  %v3608_v60 = vld [vmem:[#allocation6 + $0xcc4] ss:$16 sps:$4 sm:$0xff] (%p1058_p2)  }
 0x313   : > { %v4188_v8 = vmov %v4120_v38  ;;  %v2209_v15 = vmax.f32 %v4118_v7, 0.0   ;;  %v2202_v44 = vadd.f32 %v2192_v32, %v2158_v40  ;;  %v2206_v46 = vadd.f32 %v2192_v32, %v2162_v9  ;;  %1060 = sbr.rel (!%p1058_p2) target bundleno = 387 (0x183), region = 51  ;;  %v3610_v61 = vld [vmem:[#allocation6 + $0xec4] ss:$16 sps:$4 sm:$0xff] (%p1058_p2)   ;;  %v3612_v62 = vld [vmem:[#allocation6 + $0xcc0] ss:$16 sps:$4 sm:$0xff] (%p1058_p2)  }
 0x314   : > { %v4189_v12 = vmov %v4122_v33  ;;  %v4190_v13 = vmov %v4124_v43  ;;  %v2213_v1 = vmax.f32 %v4188_v8, 0.0   ;;  %v2204_v17 = vadd.f32 %v2200_v42, %v2160_v14  ;;  %v3613_v63 = vld [vmem:[#allocation6 + $0xec0] ss:$16 sps:$4 sm:$0xff] (%p1058_p2)   ;;  %v3626_v5 = vld [vmem:[#allocation6 + $0xd24] ss:$16 sps:$4 sm:$0xff] (%p1058_p2)  }
 0x315   : > { %v2211_v47 = vmax.f32 %v4189_v12, 0.0   ;;  %v2215_v16 = vmax.f32 %v4190_v13, 0.0   ;;  %v2208_v18 = vadd.f32 %v2200_v42, %v2164_v41  ;;  %v2210_v19 = vmax.f32 %v2202_v44, 0.0   ;;  %v3619_v2 = vld [vmem:[#allocation6 + $0xee0] ss:$16 sps:$4 sm:$0xff] (%p1058_p2)  }
 0x316   : > { %v2214_v20 = vmax.f32 %v2206_v46, 0.0   ;;  %v2212_v21 = vmax.f32 %v2204_v17, 0.0   ;;  %v4194_v42 = vmov %v2213_v1  ;;  %v4198_v32 = vmov %v2209_v15  ;;  %v3624_v3 = vld [vmem:[#allocation6 + $0xd00] ss:$16 sps:$4 sm:$0xff] (%p1058_p2)   ;;  %v3628_v36 = vld [vmem:[#allocation6 + $0xf24] ss:$16 sps:$4 sm:$0xff] (%p1058_p2)  }
 0x317   : > { %v2216_v22 = vmax.f32 %v2208_v18, 0.0   ;;  %v4192_v43 = vmov %v2215_v16  ;;  %v4196_v33 = vmov %v2211_v47  ;;  %v4197_v38 = vmov %v2210_v19  ;;  %v3616_v32 = vld [vmem:[#allocation6 + $0xee4] ss:$16 sps:$4 sm:$0xff] (%p1058_p2)   ;;  %v3618_v42 = vld [vmem:[#allocation6 + $0xce0] ss:$16 sps:$4 sm:$0xff] (%p1058_p2)  }
 0x318   : > { %v4193_v44 = vmov %v2214_v20  ;;  %v4195_v39 = vmov %v2212_v21  ;;  %v2220_v24 = vpack.c.bf16 (%p1058_p2), %v2214_v20, %v2210_v19  ;;  %v3589_v33 = vld [vmem:[#allocation6 + $0xe40] ss:$16 sps:$4 sm:$0xff] (%p1058_p2)   ;;  %v3590_v43 = vld [vmem:[#allocation6 + $0xc64] ss:$16 sps:$4 sm:$0xff] (%p1058_p2)   ;;  %v2219_v48 = vpack.c.bf16 (%p1058_p2), %v2213_v1, %v2209_v15 }
 0x319   : > { %v4191_v45 = vmov %v2216_v22  ;;  %v2222_v25 = vpack.c.bf16 (%p1058_p2), %v2216_v22, %v2212_v21  ;;  %2654 = vmatpush1.bf16.msra.mxu1 (%p1058_p2), %v3589_v33  ;;  %2614 = vmatprep.subr.bf16.mxu0 (%p1058_p2), %v3590_v43  ;;  %v3620_v39 = vld [vmem:[#allocation6 + $0xd04] ss:$16 sps:$4 sm:$0xff] (%p1058_p2)   ;;  %v3625_v4 = vld [vmem:[#allocation6 + $0xf00] ss:$16 sps:$4 sm:$0xff] (%p1058_p2)   ;;  %v2221_v10 = vpack.c.bf16 (%p1058_p2), %v2215_v16, %v2211_v47 }
 0x31a   :  { %2640 = vmatprep.mubr.bf16.mxu0 %v2220_v24  ;;  %2655 = vmatprep.subr.bf16.mxu1 %v3592_v49  ;;  %v3622_v45 = vld [vmem:[#allocation6 + $0xf04] ss:$16 sps:$4 sm:$0xff]   ;;  %v3630_v37 = vld [vmem:[#allocation6 + $0xd20] ss:$16 sps:$4 sm:$0xff]  }
 0x31b   :  { %2681 = vmatprep.mubr.bf16.mxu1 %v2222_v25  ;;  %2615 = vmatpush1.bf16.msra.mxu0 %v3594_v50  ;;  %v3631_v6 = vld [vmem:[#allocation6 + $0xf20] ss:$16 sps:$4 sm:$0xff]   ;;  %v3632_v38 = vld [vmem:[#allocation6 + $0xd44] ss:$16 sps:$4 sm:$0xff]  }
 0x31c   :  { %2616 = vmatprep.subr.bf16.mxu0 %v3596_v52  ;;  %v3634_v40 = vld [vmem:[#allocation6 + $0xf44] ss:$16 sps:$4 sm:$0xff]   ;;  %v3636_v9 = vld [vmem:[#allocation6 + $0xd40] ss:$16 sps:$4 sm:$0xff]  }
 0x31d   :  { %2656 = vmatpush1.bf16.msra.mxu1 %v3595_v51  ;;  %v3637_v14 = vld [vmem:[#allocation6 + $0xf40] ss:$16 sps:$4 sm:$0xff]   ;;  %v3638_v41 = vld [vmem:[#allocation6 + $0xd64] ss:$16 sps:$4 sm:$0xff]  }
 0x31e   :  { %2657 = vmatprep.subr.bf16.mxu1 %v3598_v53  ;;  %v3640_v44 = vld [vmem:[#allocation6 + $0xf64] ss:$16 sps:$4 sm:$0xff]   ;;  %v3642_v46 = vld [vmem:[#allocation6 + $0xd60] ss:$16 sps:$4 sm:$0xff]  }
 0x31f   :  { %2617 = vmatpush1.bf16.msra.mxu0 %v3600_v54  ;;  %v3643_v17 = vld [vmem:[#allocation6 + $0xf60] ss:$16 sps:$4 sm:$0xff]   ;;  %v3644_v18 = vld [vmem:[#allocation6 + $0xd84] ss:$16 sps:$4 sm:$0xff]  }
 0x320   :  { %2618 = vmatprep.subr.bf16.mxu0 %v3602_v56  ;;  %v3646_v19 = vld [vmem:[#allocation6 + $0xf84] ss:$16 sps:$4 sm:$0xff]   ;;  %v3648_v20 = vld [vmem:[#allocation6 + $0xd80] ss:$16 sps:$4 sm:$0xff]  }
 0x321   :  { %2658 = vmatpush1.bf16.msra.mxu1 %v3601_v55  ;;  %v3649_v21 = vld [vmem:[#allocation6 + $0xf80] ss:$16 sps:$4 sm:$0xff]   ;;  %v3650_v22 = vld [vmem:[#allocation6 + $0xda4] ss:$16 sps:$4 sm:$0xff]  }
 0x322   :  { %2659 = vmatprep.subr.bf16.mxu1 %v3604_v57  ;;  %v3654_v24 = vld [vmem:[#allocation6 + $0xda0] ss:$16 sps:$4 sm:$0xff]  }
 0x323   :  { %2619 = vmatpush1.bf16.msra.mxu0 %v3606_v58  ;;  %v3655_v25 = vld [vmem:[#allocation6 + $0xfa0] ss:$16 sps:$4 sm:$0xff]  }
 0x324   :  { %2620 = vmatprep.subr.bf16.mxu0 %v3608_v60  ;;  %v3009_v33 = vld [vmem:[%s4186_s2 + $0x30] sm:$0x77]  ;;  %s3712_s2 = scalar_lea.vmem %s2704_s27, 256 }
 0x325   :  { %2660 = vmatpush1.bf16.msra.mxu1 %v3607_v59  ;;  %v2693_v43 = vrot.slane %v3009_v33, %v3877_v11  ;;  %p3713_p3 = scmp.ne.s32.totalorder %s2704_s27, %s3712_s2  ;;  %p3718_p5 = scmp.lt.s32.totalorder %s3712_s2, %s3712_s2 }
 0x326   :  { %2661 = vmatprep.subr.bf16.mxu1 %v3610_v61 }
 0x327   :  { %2621 = vmatpush1.bf16.msra.mxu0 %v3612_v62  ;;  %p3719_p6 = por %p3718_p5, %p3717_p4 }
 0x328   :  { %2622 = vmatprep.subr.bf16.mxu0 %v3614_v0 }
 0x329   :  { %2662 = vmatpush1.bf16.msra.mxu1 %v3613_v63  ;;  %p3720_p7 = pnand %p3719_p6, %p3713_p3 }
 0x32a   :  { %2663 = vmatprep.subr.bf16.mxu1 %v3616_v32 }
 0x32b   :  { %2623 = vmatpush1.bf16.msra.mxu0 %v3618_v42 }
 0x32c   :  { %2624 = vmatprep.subr.bf16.mxu0 %v3620_v39 }
 0x32d   :  { %2664 = vmatpush1.bf16.msra.mxu1 %v3619_v2 }
 0x32e   :  { %2665 = vmatprep.subr.bf16.mxu1 %v3622_v45 }
 0x32f   :  { %2625 = vmatpush1.bf16.msra.mxu0 %v3624_v3 }
 0x330   :  { %2626 = vmatprep.subr.bf16.mxu0 %v3626_v5 }
 0x331   :  { %2666 = vmatpush1.bf16.msra.mxu1 %v3625_v4 }
 0x332   :  { %2667 = vmatprep.subr.bf16.mxu1 %v3628_v36 }
 0x333   :  { %2627 = vmatpush1.bf16.msra.mxu0 %v3630_v37 }
 0x334   :  { %2628 = vmatprep.subr.bf16.mxu0 %v3632_v38 }
 0x335   :  { %2668 = vmatpush1.bf16.msra.mxu1 %v3631_v6 }
 0x336   :  { %2669 = vmatprep.subr.bf16.mxu1 %v3634_v40 }
 0x337   :  { %2629 = vmatpush1.bf16.msra.mxu0 %v3636_v9 }
 0x338   :  { %2630 = vmatprep.subr.bf16.mxu0 %v3638_v41 }
 0x339   :  { %2670 = vmatpush1.bf16.msra.mxu1 %v3637_v14 }
 0x33a   :  { %2671 = vmatprep.subr.bf16.mxu1 %v3640_v44 }
 0x33b   :  { %2631 = vmatpush1.bf16.msra.mxu0 %v3642_v46 }
 0x33c   :  { %2632 = vmatprep.subr.bf16.mxu0 %v3644_v18 }
 0x33d   :  { %2672 = vmatpush1.bf16.msra.mxu1 %v3643_v17 }
 0x33e   :  { %2673 = vmatprep.subr.bf16.mxu1 %v3646_v19 }
 0x33f   :  { %2633 = vmatpush1.bf16.msra.mxu0 %v3648_v20 }
 0x340   :  { %2634 = vmatprep.subr.bf16.mxu0 %v3650_v22 }
 0x341   :  { %2674 = vmatpush1.bf16.msra.mxu1 %v3649_v21 }
 0x342   :  { %2675 = vmatprep.subr.bf16.mxu1 %v3652_v23 }
 0x343   :  { %2635 = vmatpush1.bf16.msra.mxu0 %v3654_v24 }
 0x344   :  { %2636 = vmatprep.subr.bf16.mxu0 %v3656_v26 }
 0x345   :  { %2676 = vmatpush1.bf16.msra.mxu1 %v3655_v25 }
 0x346   :  { %2677 = vmatprep.subr.bf16.mxu1 %v3658_v27 }
 0x347   :  { %2637 = vmatpush1.bf16.msra.mxu0 %v3660_v28 }
 0x348   :  { %2638 = vmatprep.subr.bf16.mxu0 %v3662_v30 }
 0x349   :  { %2678 = vmatpush1.bf16.msra.mxu1 %v3661_v29 }
 0x34a   :  { %2679 = vmatprep.subr.bf16.mxu1 %v3664_v31 }
 0x34b   :  { %2639 = vmatpush1.bf16.msra.mxu0 %v3666_v34 }
 0x34d   :  { %2680 = vmatpush1.bf16.msra.mxu1 %v3667_v35 }
 0x34e   :  { %2641 = vmatmul.mubr.bf16.vlgmr.msra.gmra.mrb[0].mxu0 %v2219_v48 }
 0x350   :  { %2682 = vmatmul.mubr.bf16.vlgmr.msra.gmra.mrb[0].mxu1 %v2221_v10 }
 0x421   :  { %v2642_v49 = vpop.f32.mrb[0].mxu0 }
 0x422   :  { %v2644_v8 = vpop.f32.mrb[1].mxu0 }
 0x423   :  { %v2683_v7 = vpop.f32.mrb[0].mxu1  ;;  %v2645_v1 = vpop.f32.mrb[2].mxu0 }
 0x424   :  { %v2684_v50 = vadd.f32 %v2683_v7, %v2642_v49  ;;  %v2685_v15 = vpop.f32.mrb[1].mxu1  ;;  %v2647_v47 = vpop.f32.mrb[3].mxu0 }
 0x425   :  { %v2686_v12 = vpop.f32.mrb[2].mxu1 }
 0x426   :  { %v2687_v13 = vadd.f32 %v2686_v12, %v2645_v1  ;;  %v2688_v16 = vpop.f32.mrb[3].mxu1  ;;  %v2694_v51 = vadd.f32 %v2693_v43, %v2684_v50 }
 0x428   :  { %v2695_v52 = vadd.f32 %v2693_v43, %v2687_v13  ;;  %2696 = vst [vmem:[#allocation8] sm:$0xff] %v2694_v51 }
 0x42a   :  { %2697 = vst [vmem:[#allocation8 + $0x8] sm:$0xff] %v2695_v52 }
 0x42b   :  { %3723 = shalt.err (!%p3720_p7)
}
 0x42c   :  { %s3724_s30 = scalar_lea.hbm %s4187_s3, 256 }
 0x42d   :  { %p3725_p8 = scmp.ne.s32.totalorder %s4187_s3, %s3724_s30  ;;  %p3728_p9 = scmp.lt.u32.totalorder %s3724_s30, %s4187_s3 }
 0x42f   :  { %p3730_p10 = pnand %p3728_p9, %p3725_p8 }
 0x431   :  { %3733 = shalt.err (!%p3730_p10)
}
 0x432   :  { %2709 = dma.vmem_to_hbm [thread:$0]  %s2704_s27, 256, %s4187_s3, [#allocation5], %s3813_s22, %s3813_s22, %s3814_s23  }
 0x433   :  { %3774 = dma.done.wait [#allocation5], 256  }
 0x434   :  { %3775 = vsyncadd [#allocation5], 4294967040 }
 0x435   :  { %2713 = vsyncpa [#allocation4], 1 }
 0x436   :  { %2714 = vsyncpa [#allocation7], 1 }
 0x437   :  { %2715 = vsyncpa [#allocation5], 1 }

</bundles_post_ra>
